<compile_context>
chip_gen: v6e
topology: v6e:2x2x1
jax: 0.10.0
libtpu: 0.0.40
codegen_flags: <defaults>
</compile_context>

<pallas_src>
import functools

import jax
import jax.numpy as jnp
from jax.experimental import pallas as pl
from jax.experimental.pallas import tpu as pltpu


_RC = 32  # rows consumed per inner chunk (multiple of 8; divides any 128-multiple tile)


# ---------------------------------------------------------------------------
# Kernel: one (TM, B) row block -> lane-dense (8, 128) partial sum.
# ---------------------------------------------------------------------------
def _bpr_loss_kernel(logit_ref, diag_ref, out_ref, *, row_chunks, col_chunks,
                     unroll):
    def row_body(r, acc):
        r0 = pl.multiple_of(r * _RC, _RC)
        d = diag_ref[pl.ds(r0, _RC), :]                               # (RC, 1) f32
        for c in range(col_chunks):                                   # static unroll
            x = logit_ref[pl.ds(r0, _RC), pl.ds(c * 128, 128)].astype(jnp.float32)
            diff = d - x                                              # (RC, 128)
            # Numerically stable log(sigmoid(diff)) = min(diff,0) - log1p(exp(-|diff|)).
            ls = jnp.minimum(diff, 0.0) - jnp.log1p(jnp.exp(-jnp.abs(diff)))
            for s in range(_RC // 8):                                 # vreg sub-slices
                acc = acc + ls[s * 8:(s + 1) * 8, :]
        return acc

    acc = jax.lax.fori_loop(0, row_chunks, row_body,
                            jnp.zeros((8, 128), jnp.float32), unroll=unroll)
    out_ref[0] = acc


# ---------------------------------------------------------------------------
# Tiling helpers.
# ---------------------------------------------------------------------------
def _pick_row_tile(bp, itemsize, vmem_cap):
    """Largest 128-multiple divisor of bp whose (tm, bp) input block fits a
    generation-aware budget, preferring >=2 blocks (ideally an even count) so
    the parallel grid axis splits across both v7x TensorCores."""
    budget = min(8 << 20, vmem_cap // 8)
    cands = [t for t in range(128, bp + 1, 128)
             if bp % t == 0 and t * bp * itemsize <= budget]
    if not cands:
        # Gigantic B: would want a second (column) grid axis; fall back to the
        # lane-aligned minimum row tile for now.
        cands = [128]

    def key(t):
        nblk = bp // t
        return (nblk >= 2, nblk % 2 == 0, t)

    return max(cands, key=key)


# ---------------------------------------------------------------------------
# Wrapper.
# ---------------------------------------------------------------------------
def bpr_loss(logit):
    """logit: (B, B) array (f32 or bf16). Returns scalar float32 loss."""
    B = logit.shape[0]
    assert logit.shape == (B, B), "BPRLoss expects a square (B, B) logit matrix"
    itemsize = jnp.dtype(logit.dtype).itemsize

    # Diagonal hoisted out of the kernel (tiny gather), taken before padding.
    diag = jnp.diagonal(logit).astype(jnp.float32)[:, None]           # (B, 1) f32

    # Pad ragged B to a lane multiple.  Padded logits are a huge negative, so
    # diff = diag - (-1e9) is huge positive and logsigmoid(diff) == 0.0 exactly
    # (min(huge,0)=0, exp(-huge)=0, log1p(0)=0): zero extra contribution.
    bp = ((B + 127) // 128) * 128
    if bp != B:
        pad = bp - B
        logit = jnp.pad(logit, ((0, pad), (0, pad)), constant_values=-1e9)
        diag = jnp.pad(diag, ((0, pad), (0, 0)))                      # padded diag = 0

    try:
        vmem_cap = int(pltpu.get_tpu_info().vmem_capacity_bytes)
    except Exception:
        vmem_cap = 64 << 20  # conservative (v7x-sized) default

    tm = _pick_row_tile(bp, itemsize, vmem_cap)
    nblk = bp // tm
    tile_bytes = tm * bp * itemsize
    # Double-buffered input tile + (lane-padded) diag tile + headroom; in-kernel
    # temporaries are only a few vregs now.  Clamp below physical VMEM.
    required = 2 * (tile_bytes + tm * 128 * 4) + (2 << 20)
    vmem_limit = int(min(max(32 << 20, required), vmem_cap - (8 << 20)))

    col_chunks = bp // 128
    row_chunks = tm // _RC            # multiple of 4 (tm is a multiple of 128)
    unroll = 4 if col_chunks <= 4 else 1

    cost = pl.CostEstimate(
        flops=8 * bp * bp,            # sub/min/abs/neg/add chain (VPU)
        transcendentals=2 * bp * bp,  # exp + log1p per element (EUP)
        bytes_accessed=bp * bp * itemsize + bp * 4 + nblk * 8 * 128 * 4,
    )

    partials = pl.pallas_call(
        functools.partial(_bpr_loss_kernel, row_chunks=row_chunks,
                          col_chunks=col_chunks, unroll=unroll),
        out_shape=jax.ShapeDtypeStruct((nblk, 8, 128), jnp.float32),
        grid=(nblk,),
        in_specs=[pl.BlockSpec((tm, bp), lambda i: (i, 0)),
                  pl.BlockSpec((tm, 1), lambda i: (i, 0))],
        out_specs=pl.BlockSpec((1, 8, 128), lambda i: (i, 0, 0)),
        compiler_params=pltpu.CompilerParams(
            dimension_semantics=("parallel",),
            vmem_limit_bytes=vmem_limit),
        cost_estimate=cost,
    )(logit, diag)

    # Tiny epilogue: one reduce over nblk*1024 partials, multiply (not divide)
    # by the precomputed 1/B^2 (original B — padding contributed exactly 0),
    # and negate.
    return -(jnp.sum(partials, dtype=jnp.float32) * jnp.float32(1.0 / (B * B)))


def _bpr_loss_ref(logit):
    """Pure-JAX reference mirroring the PyTorch module."""
    x = logit.astype(jnp.float32)
    diff = jnp.diag(x)[:, None] - x
    return -jnp.mean(jax.nn.log_sigmoid(diff))


if __name__ == "__main__":
    key = jax.random.PRNGKey(0)

    # Aligned path: B multiple of 128 with several row blocks (TM=128 -> 3 blocks),
    # exercising the pipelined grid, the hoisted-diag side input and the
    # chunked in-kernel accumulation.
    B = 384
    logit = jax.random.normal(key, (B, B), dtype=jnp.float32)
    loss = jax.block_until_ready(bpr_loss(logit))
    ref = _bpr_loss_ref(logit)
    assert jnp.allclose(loss, ref, rtol=1e-4, atol=1e-4), (loss, ref)

    # bf16 storage path (compute still f32 inside the kernel).
    logit_bf16 = logit.astype(jnp.bfloat16)
    loss_bf16 = jax.block_until_ready(bpr_loss(logit_bf16))
    ref_bf16 = _bpr_loss_ref(logit_bf16.astype(jnp.float32))
    assert jnp.allclose(loss_bf16, ref_bf16, rtol=1e-4, atol=1e-4), (loss_bf16, ref_bf16)

    # Ragged B: padded to 256 (two blocks), exercising padded rows + columns.
    B_r = 200
    logit_r = jax.random.normal(jax.random.PRNGKey(1), (B_r, B_r), dtype=jnp.float32)
    loss_r = jax.block_until_ready(bpr_loss(logit_r))
    ref_r = _bpr_loss_ref(logit_r)
    assert jnp.allclose(loss_r, ref_r, rtol=1e-4, atol=1e-4), (loss_r, ref_r)

    # Tiny B: padded to a single 128x128 block.
    B_s = 8
    logit_s = jax.random.normal(jax.random.PRNGKey(2), (B_s, B_s), dtype=jnp.float32)
    loss_s = jax.block_until_ready(bpr_loss(logit_s))
    ref_s = _bpr_loss_ref(logit_s)
    assert jnp.allclose(loss_s, ref_s, rtol=1e-5, atol=1e-5), (loss_s, ref_s)

    print("KERNEL_OK")
</pallas_src>

<mosaic_0001>
module attributes {stable_mosaic.version = 11 : i64} {
  func.func @_bpr_loss_kernel(%arg0: i32, %arg1: memref<128x384xf32, #tpu.memory_space<vmem>>, %arg2: memref<128x1xf32, #tpu.memory_space<vmem>>, %arg3: memref<1x8x128xf32, #tpu.memory_space<vmem>>) attributes {dimension_semantics = [#tpu.dimension_semantics<parallel>], iteration_bounds = array<i64: 3>, scalar_prefetch = 0 : i64, scratch_operands = 0 : i64, tpu.core_type = #tpu.core_type<tc>, window_params = [{transform_indices = @transform_0, window_bounds = array<i64: 128, 384>}, {transform_indices = @transform_1, window_bounds = array<i64: 128, 1>}, {transform_indices = @transform_2, window_bounds = array<i64: 1, 8, 128>}]} {
    %cst = arith.constant 0.000000e+00 : f32
    %0 = vector.broadcast %cst : f32 to vector<8x128xf32>
    %c0_i32 = arith.constant 0 : i32
    %c32_i32 = arith.constant 32 : i32
    %1 = arith.muli %c0_i32, %c32_i32 : i32
    %2 = tpu.assume_multiple %1, 32 : i32
    %3 = arith.index_cast %2 : i32 to index
    %c0 = arith.constant 0 : index
    %4 = vector.load %arg2[%3, %c0] : memref<128x1xf32, #tpu.memory_space<vmem>>, vector<32x1xf32>
    %5 = arith.index_cast %2 : i32 to index
    %c0_0 = arith.constant 0 : index
    %6 = vector.load %arg1[%5, %c0_0] : memref<128x384xf32, #tpu.memory_space<vmem>>, vector<32x128xf32>
    %7 = vector.broadcast %4 : vector<32x1xf32> to vector<32x128xf32>
    %8 = arith.subf %7, %6 : vector<32x128xf32>
    %cst_1 = arith.constant 0.000000e+00 : f32
    %9 = vector.broadcast %cst_1 : f32 to vector<32x128xf32>
    %10 = arith.minimumf %8, %9 : vector<32x128xf32>
    %11 = math.absf %8 : vector<32x128xf32>
    %cst_2 = arith.constant 0.000000e+00 : f32
    %12 = vector.broadcast %cst_2 : f32 to vector<32x128xf32>
    %13 = arith.subf %12, %11 : vector<32x128xf32>
    %14 = math.exp %13 : vector<32x128xf32>
    %15 = math.log1p %14 : vector<32x128xf32>
    %16 = arith.subf %10, %15 : vector<32x128xf32>
    %17 = vector.extract_strided_slice %16 {offsets = [0, 0], sizes = [8, 128], strides = [1, 1]} : vector<32x128xf32> to vector<8x128xf32>
    %18 = arith.addf %0, %17 : vector<8x128xf32>
    %19 = vector.extract_strided_slice %16 {offsets = [8, 0], sizes = [8, 128], strides = [1, 1]} : vector<32x128xf32> to vector<8x128xf32>
    %20 = arith.addf %18, %19 : vector<8x128xf32>
    %21 = vector.extract_strided_slice %16 {offsets = [16, 0], sizes = [8, 128], strides = [1, 1]} : vector<32x128xf32> to vector<8x128xf32>
    %22 = arith.addf %20, %21 : vector<8x128xf32>
    %23 = vector.extract_strided_slice %16 {offsets = [24, 0], sizes = [8, 128], strides = [1, 1]} : vector<32x128xf32> to vector<8x128xf32>
    %24 = arith.addf %22, %23 : vector<8x128xf32>
    %25 = arith.index_cast %2 : i32 to index
    %c128 = arith.constant 128 : index
    %26 = vector.load %arg1[%25, %c128] : memref<128x384xf32, #tpu.memory_space<vmem>>, vector<32x128xf32>
    %27 = vector.broadcast %4 : vector<32x1xf32> to vector<32x128xf32>
    %28 = arith.subf %27, %26 : vector<32x128xf32>
    %cst_3 = arith.constant 0.000000e+00 : f32
    %29 = vector.broadcast %cst_3 : f32 to vector<32x128xf32>
    %30 = arith.minimumf %28, %29 : vector<32x128xf32>
    %31 = math.absf %28 : vector<32x128xf32>
    %cst_4 = arith.constant 0.000000e+00 : f32
    %32 = vector.broadcast %cst_4 : f32 to vector<32x128xf32>
    %33 = arith.subf %32, %31 : vector<32x128xf32>
    %34 = math.exp %33 : vector<32x128xf32>
    %35 = math.log1p %34 : vector<32x128xf32>
    %36 = arith.subf %30, %35 : vector<32x128xf32>
    %37 = vector.extract_strided_slice %36 {offsets = [0, 0], sizes = [8, 128], strides = [1, 1]} : vector<32x128xf32> to vector<8x128xf32>
    %38 = arith.addf %24, %37 : vector<8x128xf32>
    %39 = vector.extract_strided_slice %36 {offsets = [8, 0], sizes = [8, 128], strides = [1, 1]} : vector<32x128xf32> to vector<8x128xf32>
    %40 = arith.addf %38, %39 : vector<8x128xf32>
    %41 = vector.extract_strided_slice %36 {offsets = [16, 0], sizes = [8, 128], strides = [1, 1]} : vector<32x128xf32> to vector<8x128xf32>
    %42 = arith.addf %40, %41 : vector<8x128xf32>
    %43 = vector.extract_strided_slice %36 {offsets = [24, 0], sizes = [8, 128], strides = [1, 1]} : vector<32x128xf32> to vector<8x128xf32>
    %44 = arith.addf %42, %43 : vector<8x128xf32>
    %45 = arith.index_cast %2 : i32 to index
    %c256 = arith.constant 256 : index
    %46 = vector.load %arg1[%45, %c256] : memref<128x384xf32, #tpu.memory_space<vmem>>, vector<32x128xf32>
    %47 = vector.broadcast %4 : vector<32x1xf32> to vector<32x128xf32>
    %48 = arith.subf %47, %46 : vector<32x128xf32>
    %cst_5 = arith.constant 0.000000e+00 : f32
    %49 = vector.broadcast %cst_5 : f32 to vector<32x128xf32>
    %50 = arith.minimumf %48, %49 : vector<32x128xf32>
    %51 = math.absf %48 : vector<32x128xf32>
    %cst_6 = arith.constant 0.000000e+00 : f32
    %52 = vector.broadcast %cst_6 : f32 to vector<32x128xf32>
    %53 = arith.subf %52, %51 : vector<32x128xf32>
    %54 = math.exp %53 : vector<32x128xf32>
    %55 = math.log1p %54 : vector<32x128xf32>
    %56 = arith.subf %50, %55 : vector<32x128xf32>
    %57 = vector.extract_strided_slice %56 {offsets = [0, 0], sizes = [8, 128], strides = [1, 1]} : vector<32x128xf32> to vector<8x128xf32>
    %58 = arith.addf %44, %57 : vector<8x128xf32>
    %59 = vector.extract_strided_slice %56 {offsets = [8, 0], sizes = [8, 128], strides = [1, 1]} : vector<32x128xf32> to vector<8x128xf32>
    %60 = arith.addf %58, %59 : vector<8x128xf32>
    %61 = vector.extract_strided_slice %56 {offsets = [16, 0], sizes = [8, 128], strides = [1, 1]} : vector<32x128xf32> to vector<8x128xf32>
    %62 = arith.addf %60, %61 : vector<8x128xf32>
    %63 = vector.extract_strided_slice %56 {offsets = [24, 0], sizes = [8, 128], strides = [1, 1]} : vector<32x128xf32> to vector<8x128xf32>
    %64 = arith.addf %62, %63 : vector<8x128xf32>
    %c1_i32 = arith.constant 1 : i32
    %c32_i32_7 = arith.constant 32 : i32
    %65 = arith.muli %c1_i32, %c32_i32_7 : i32
    %66 = tpu.assume_multiple %65, 32 : i32
    %67 = arith.index_cast %66 : i32 to index
    %c0_8 = arith.constant 0 : index
    %68 = vector.load %arg2[%67, %c0_8] : memref<128x1xf32, #tpu.memory_space<vmem>>, vector<32x1xf32>
    %69 = arith.index_cast %66 : i32 to index
    %c0_9 = arith.constant 0 : index
    %70 = vector.load %arg1[%69, %c0_9] : memref<128x384xf32, #tpu.memory_space<vmem>>, vector<32x128xf32>
    %71 = vector.broadcast %68 : vector<32x1xf32> to vector<32x128xf32>
    %72 = arith.subf %71, %70 : vector<32x128xf32>
    %cst_10 = arith.constant 0.000000e+00 : f32
    %73 = vector.broadcast %cst_10 : f32 to vector<32x128xf32>
    %74 = arith.minimumf %72, %73 : vector<32x128xf32>
    %75 = math.absf %72 : vector<32x128xf32>
    %cst_11 = arith.constant 0.000000e+00 : f32
    %76 = vector.broadcast %cst_11 : f32 to vector<32x128xf32>
    %77 = arith.subf %76, %75 : vector<32x128xf32>
    %78 = math.exp %77 : vector<32x128xf32>
    %79 = math.log1p %78 : vector<32x128xf32>
    %80 = arith.subf %74, %79 : vector<32x128xf32>
    %81 = vector.extract_strided_slice %80 {offsets = [0, 0], sizes = [8, 128], strides = [1, 1]} : vector<32x128xf32> to vector<8x128xf32>
    %82 = arith.addf %64, %81 : vector<8x128xf32>
    %83 = vector.extract_strided_slice %80 {offsets = [8, 0], sizes = [8, 128], strides = [1, 1]} : vector<32x128xf32> to vector<8x128xf32>
    %84 = arith.addf %82, %83 : vector<8x128xf32>
    %85 = vector.extract_strided_slice %80 {offsets = [16, 0], sizes = [8, 128], strides = [1, 1]} : vector<32x128xf32> to vector<8x128xf32>
    %86 = arith.addf %84, %85 : vector<8x128xf32>
    %87 = vector.extract_strided_slice %80 {offsets = [24, 0], sizes = [8, 128], strides = [1, 1]} : vector<32x128xf32> to vector<8x128xf32>
    %88 = arith.addf %86, %87 : vector<8x128xf32>
    %89 = arith.index_cast %66 : i32 to index
    %c128_12 = arith.constant 128 : index
    %90 = vector.load %arg1[%89, %c128_12] : memref<128x384xf32, #tpu.memory_space<vmem>>, vector<32x128xf32>
    %91 = vector.broadcast %68 : vector<32x1xf32> to vector<32x128xf32>
    %92 = arith.subf %91, %90 : vector<32x128xf32>
    %cst_13 = arith.constant 0.000000e+00 : f32
    %93 = vector.broadcast %cst_13 : f32 to vector<32x128xf32>
    %94 = arith.minimumf %92, %93 : vector<32x128xf32>
    %95 = math.absf %92 : vector<32x128xf32>
    %cst_14 = arith.constant 0.000000e+00 : f32
    %96 = vector.broadcast %cst_14 : f32 to vector<32x128xf32>
    %97 = arith.subf %96, %95 : vector<32x128xf32>
    %98 = math.exp %97 : vector<32x128xf32>
    %99 = math.log1p %98 : vector<32x128xf32>
    %100 = arith.subf %94, %99 : vector<32x128xf32>
    %101 = vector.extract_strided_slice %100 {offsets = [0, 0], sizes = [8, 128], strides = [1, 1]} : vector<32x128xf32> to vector<8x128xf32>
    %102 = arith.addf %88, %101 : vector<8x128xf32>
    %103 = vector.extract_strided_slice %100 {offsets = [8, 0], sizes = [8, 128], strides = [1, 1]} : vector<32x128xf32> to vector<8x128xf32>
    %104 = arith.addf %102, %103 : vector<8x128xf32>
    %105 = vector.extract_strided_slice %100 {offsets = [16, 0], sizes = [8, 128], strides = [1, 1]} : vector<32x128xf32> to vector<8x128xf32>
    %106 = arith.addf %104, %105 : vector<8x128xf32>
    %107 = vector.extract_strided_slice %100 {offsets = [24, 0], sizes = [8, 128], strides = [1, 1]} : vector<32x128xf32> to vector<8x128xf32>
    %108 = arith.addf %106, %107 : vector<8x128xf32>
    %109 = arith.index_cast %66 : i32 to index
    %c256_15 = arith.constant 256 : index
    %110 = vector.load %arg1[%109, %c256_15] : memref<128x384xf32, #tpu.memory_space<vmem>>, vector<32x128xf32>
    %111 = vector.broadcast %68 : vector<32x1xf32> to vector<32x128xf32>
    %112 = arith.subf %111, %110 : vector<32x128xf32>
    %cst_16 = arith.constant 0.000000e+00 : f32
    %113 = vector.broadcast %cst_16 : f32 to vector<32x128xf32>
    %114 = arith.minimumf %112, %113 : vector<32x128xf32>
    %115 = math.absf %112 : vector<32x128xf32>
    %cst_17 = arith.constant 0.000000e+00 : f32
    %116 = vector.broadcast %cst_17 : f32 to vector<32x128xf32>
    %117 = arith.subf %116, %115 : vector<32x128xf32>
    %118 = math.exp %117 : vector<32x128xf32>
    %119 = math.log1p %118 : vector<32x128xf32>
    %120 = arith.subf %114, %119 : vector<32x128xf32>
    %121 = vector.extract_strided_slice %120 {offsets = [0, 0], sizes = [8, 128], strides = [1, 1]} : vector<32x128xf32> to vector<8x128xf32>
    %122 = arith.addf %108, %121 : vector<8x128xf32>
    %123 = vector.extract_strided_slice %120 {offsets = [8, 0], sizes = [8, 128], strides = [1, 1]} : vector<32x128xf32> to vector<8x128xf32>
    %124 = arith.addf %122, %123 : vector<8x128xf32>
    %125 = vector.extract_strided_slice %120 {offsets = [16, 0], sizes = [8, 128], strides = [1, 1]} : vector<32x128xf32> to vector<8x128xf32>
    %126 = arith.addf %124, %125 : vector<8x128xf32>
    %127 = vector.extract_strided_slice %120 {offsets = [24, 0], sizes = [8, 128], strides = [1, 1]} : vector<32x128xf32> to vector<8x128xf32>
    %128 = arith.addf %126, %127 : vector<8x128xf32>
    %c2_i32 = arith.constant 2 : i32
    %c32_i32_18 = arith.constant 32 : i32
    %129 = arith.muli %c2_i32, %c32_i32_18 : i32
    %130 = tpu.assume_multiple %129, 32 : i32
    %131 = arith.index_cast %130 : i32 to index
    %c0_19 = arith.constant 0 : index
    %132 = vector.load %arg2[%131, %c0_19] : memref<128x1xf32, #tpu.memory_space<vmem>>, vector<32x1xf32>
    %133 = arith.index_cast %130 : i32 to index
    %c0_20 = arith.constant 0 : index
    %134 = vector.load %arg1[%133, %c0_20] : memref<128x384xf32, #tpu.memory_space<vmem>>, vector<32x128xf32>
    %135 = vector.broadcast %132 : vector<32x1xf32> to vector<32x128xf32>
    %136 = arith.subf %135, %134 : vector<32x128xf32>
    %cst_21 = arith.constant 0.000000e+00 : f32
    %137 = vector.broadcast %cst_21 : f32 to vector<32x128xf32>
    %138 = arith.minimumf %136, %137 : vector<32x128xf32>
    %139 = math.absf %136 : vector<32x128xf32>
    %cst_22 = arith.constant 0.000000e+00 : f32
    %140 = vector.broadcast %cst_22 : f32 to vector<32x128xf32>
    %141 = arith.subf %140, %139 : vector<32x128xf32>
    %142 = math.exp %141 : vector<32x128xf32>
    %143 = math.log1p %142 : vector<32x128xf32>
    %144 = arith.subf %138, %143 : vector<32x128xf32>
    %145 = vector.extract_strided_slice %144 {offsets = [0, 0], sizes = [8, 128], strides = [1, 1]} : vector<32x128xf32> to vector<8x128xf32>
    %146 = arith.addf %128, %145 : vector<8x128xf32>
    %147 = vector.extract_strided_slice %144 {offsets = [8, 0], sizes = [8, 128], strides = [1, 1]} : vector<32x128xf32> to vector<8x128xf32>
    %148 = arith.addf %146, %147 : vector<8x128xf32>
    %149 = vector.extract_strided_slice %144 {offsets = [16, 0], sizes = [8, 128], strides = [1, 1]} : vector<32x128xf32> to vector<8x128xf32>
    %150 = arith.addf %148, %149 : vector<8x128xf32>
    %151 = vector.extract_strided_slice %144 {offsets = [24, 0], sizes = [8, 128], strides = [1, 1]} : vector<32x128xf32> to vector<8x128xf32>
    %152 = arith.addf %150, %151 : vector<8x128xf32>
    %153 = arith.index_cast %130 : i32 to index
    %c128_23 = arith.constant 128 : index
    %154 = vector.load %arg1[%153, %c128_23] : memref<128x384xf32, #tpu.memory_space<vmem>>, vector<32x128xf32>
    %155 = vector.broadcast %132 : vector<32x1xf32> to vector<32x128xf32>
    %156 = arith.subf %155, %154 : vector<32x128xf32>
    %cst_24 = arith.constant 0.000000e+00 : f32
    %157 = vector.broadcast %cst_24 : f32 to vector<32x128xf32>
    %158 = arith.minimumf %156, %157 : vector<32x128xf32>
    %159 = math.absf %156 : vector<32x128xf32>
    %cst_25 = arith.constant 0.000000e+00 : f32
    %160 = vector.broadcast %cst_25 : f32 to vector<32x128xf32>
    %161 = arith.subf %160, %159 : vector<32x128xf32>
    %162 = math.exp %161 : vector<32x128xf32>
    %163 = math.log1p %162 : vector<32x128xf32>
    %164 = arith.subf %158, %163 : vector<32x128xf32>
    %165 = vector.extract_strided_slice %164 {offsets = [0, 0], sizes = [8, 128], strides = [1, 1]} : vector<32x128xf32> to vector<8x128xf32>
    %166 = arith.addf %152, %165 : vector<8x128xf32>
    %167 = vector.extract_strided_slice %164 {offsets = [8, 0], sizes = [8, 128], strides = [1, 1]} : vector<32x128xf32> to vector<8x128xf32>
    %168 = arith.addf %166, %167 : vector<8x128xf32>
    %169 = vector.extract_strided_slice %164 {offsets = [16, 0], sizes = [8, 128], strides = [1, 1]} : vector<32x128xf32> to vector<8x128xf32>
    %170 = arith.addf %168, %169 : vector<8x128xf32>
    %171 = vector.extract_strided_slice %164 {offsets = [24, 0], sizes = [8, 128], strides = [1, 1]} : vector<32x128xf32> to vector<8x128xf32>
    %172 = arith.addf %170, %171 : vector<8x128xf32>
    %173 = arith.index_cast %130 : i32 to index
    %c256_26 = arith.constant 256 : index
    %174 = vector.load %arg1[%173, %c256_26] : memref<128x384xf32, #tpu.memory_space<vmem>>, vector<32x128xf32>
    %175 = vector.broadcast %132 : vector<32x1xf32> to vector<32x128xf32>
    %176 = arith.subf %175, %174 : vector<32x128xf32>
    %cst_27 = arith.constant 0.000000e+00 : f32
    %177 = vector.broadcast %cst_27 : f32 to vector<32x128xf32>
    %178 = arith.minimumf %176, %177 : vector<32x128xf32>
    %179 = math.absf %176 : vector<32x128xf32>
    %cst_28 = arith.constant 0.000000e+00 : f32
    %180 = vector.broadcast %cst_28 : f32 to vector<32x128xf32>
    %181 = arith.subf %180, %179 : vector<32x128xf32>
    %182 = math.exp %181 : vector<32x128xf32>
    %183 = math.log1p %182 : vector<32x128xf32>
    %184 = arith.subf %178, %183 : vector<32x128xf32>
    %185 = vector.extract_strided_slice %184 {offsets = [0, 0], sizes = [8, 128], strides = [1, 1]} : vector<32x128xf32> to vector<8x128xf32>
    %186 = arith.addf %172, %185 : vector<8x128xf32>
    %187 = vector.extract_strided_slice %184 {offsets = [8, 0], sizes = [8, 128], strides = [1, 1]} : vector<32x128xf32> to vector<8x128xf32>
    %188 = arith.addf %186, %187 : vector<8x128xf32>
    %189 = vector.extract_strided_slice %184 {offsets = [16, 0], sizes = [8, 128], strides = [1, 1]} : vector<32x128xf32> to vector<8x128xf32>
    %190 = arith.addf %188, %189 : vector<8x128xf32>
    %191 = vector.extract_strided_slice %184 {offsets = [24, 0], sizes = [8, 128], strides = [1, 1]} : vector<32x128xf32> to vector<8x128xf32>
    %192 = arith.addf %190, %191 : vector<8x128xf32>
    %c3_i32 = arith.constant 3 : i32
    %c32_i32_29 = arith.constant 32 : i32
    %193 = arith.muli %c3_i32, %c32_i32_29 : i32
    %194 = tpu.assume_multiple %193, 32 : i32
    %195 = arith.index_cast %194 : i32 to index
    %c0_30 = arith.constant 0 : index
    %196 = vector.load %arg2[%195, %c0_30] : memref<128x1xf32, #tpu.memory_space<vmem>>, vector<32x1xf32>
    %197 = arith.index_cast %194 : i32 to index
    %c0_31 = arith.constant 0 : index
    %198 = vector.load %arg1[%197, %c0_31] : memref<128x384xf32, #tpu.memory_space<vmem>>, vector<32x128xf32>
    %199 = vector.broadcast %196 : vector<32x1xf32> to vector<32x128xf32>
    %200 = arith.subf %199, %198 : vector<32x128xf32>
    %cst_32 = arith.constant 0.000000e+00 : f32
    %201 = vector.broadcast %cst_32 : f32 to vector<32x128xf32>
    %202 = arith.minimumf %200, %201 : vector<32x128xf32>
    %203 = math.absf %200 : vector<32x128xf32>
    %cst_33 = arith.constant 0.000000e+00 : f32
    %204 = vector.broadcast %cst_33 : f32 to vector<32x128xf32>
    %205 = arith.subf %204, %203 : vector<32x128xf32>
    %206 = math.exp %205 : vector<32x128xf32>
    %207 = math.log1p %206 : vector<32x128xf32>
    %208 = arith.subf %202, %207 : vector<32x128xf32>
    %209 = vector.extract_strided_slice %208 {offsets = [0, 0], sizes = [8, 128], strides = [1, 1]} : vector<32x128xf32> to vector<8x128xf32>
    %210 = arith.addf %192, %209 : vector<8x128xf32>
    %211 = vector.extract_strided_slice %208 {offsets = [8, 0], sizes = [8, 128], strides = [1, 1]} : vector<32x128xf32> to vector<8x128xf32>
    %212 = arith.addf %210, %211 : vector<8x128xf32>
    %213 = vector.extract_strided_slice %208 {offsets = [16, 0], sizes = [8, 128], strides = [1, 1]} : vector<32x128xf32> to vector<8x128xf32>
    %214 = arith.addf %212, %213 : vector<8x128xf32>
    %215 = vector.extract_strided_slice %208 {offsets = [24, 0], sizes = [8, 128], strides = [1, 1]} : vector<32x128xf32> to vector<8x128xf32>
    %216 = arith.addf %214, %215 : vector<8x128xf32>
    %217 = arith.index_cast %194 : i32 to index
    %c128_34 = arith.constant 128 : index
    %218 = vector.load %arg1[%217, %c128_34] : memref<128x384xf32, #tpu.memory_space<vmem>>, vector<32x128xf32>
    %219 = vector.broadcast %196 : vector<32x1xf32> to vector<32x128xf32>
    %220 = arith.subf %219, %218 : vector<32x128xf32>
    %cst_35 = arith.constant 0.000000e+00 : f32
    %221 = vector.broadcast %cst_35 : f32 to vector<32x128xf32>
    %222 = arith.minimumf %220, %221 : vector<32x128xf32>
    %223 = math.absf %220 : vector<32x128xf32>
    %cst_36 = arith.constant 0.000000e+00 : f32
    %224 = vector.broadcast %cst_36 : f32 to vector<32x128xf32>
    %225 = arith.subf %224, %223 : vector<32x128xf32>
    %226 = math.exp %225 : vector<32x128xf32>
    %227 = math.log1p %226 : vector<32x128xf32>
    %228 = arith.subf %222, %227 : vector<32x128xf32>
    %229 = vector.extract_strided_slice %228 {offsets = [0, 0], sizes = [8, 128], strides = [1, 1]} : vector<32x128xf32> to vector<8x128xf32>
    %230 = arith.addf %216, %229 : vector<8x128xf32>
    %231 = vector.extract_strided_slice %228 {offsets = [8, 0], sizes = [8, 128], strides = [1, 1]} : vector<32x128xf32> to vector<8x128xf32>
    %232 = arith.addf %230, %231 : vector<8x128xf32>
    %233 = vector.extract_strided_slice %228 {offsets = [16, 0], sizes = [8, 128], strides = [1, 1]} : vector<32x128xf32> to vector<8x128xf32>
    %234 = arith.addf %232, %233 : vector<8x128xf32>
    %235 = vector.extract_strided_slice %228 {offsets = [24, 0], sizes = [8, 128], strides = [1, 1]} : vector<32x128xf32> to vector<8x128xf32>
    %236 = arith.addf %234, %235 : vector<8x128xf32>
    %237 = arith.index_cast %194 : i32 to index
    %c256_37 = arith.constant 256 : index
    %238 = vector.load %arg1[%237, %c256_37] : memref<128x384xf32, #tpu.memory_space<vmem>>, vector<32x128xf32>
    %239 = vector.broadcast %196 : vector<32x1xf32> to vector<32x128xf32>
    %240 = arith.subf %239, %238 : vector<32x128xf32>
    %cst_38 = arith.constant 0.000000e+00 : f32
    %241 = vector.broadcast %cst_38 : f32 to vector<32x128xf32>
    %242 = arith.minimumf %240, %241 : vector<32x128xf32>
    %243 = math.absf %240 : vector<32x128xf32>
    %cst_39 = arith.constant 0.000000e+00 : f32
    %244 = vector.broadcast %cst_39 : f32 to vector<32x128xf32>
    %245 = arith.subf %244, %243 : vector<32x128xf32>
    %246 = math.exp %245 : vector<32x128xf32>
    %247 = math.log1p %246 : vector<32x128xf32>
    %248 = arith.subf %242, %247 : vector<32x128xf32>
    %249 = vector.extract_strided_slice %248 {offsets = [0, 0], sizes = [8, 128], strides = [1, 1]} : vector<32x128xf32> to vector<8x128xf32>
    %250 = arith.addf %236, %249 : vector<8x128xf32>
    %251 = vector.extract_strided_slice %248 {offsets = [8, 0], sizes = [8, 128], strides = [1, 1]} : vector<32x128xf32> to vector<8x128xf32>
    %252 = arith.addf %250, %251 : vector<8x128xf32>
    %253 = vector.extract_strided_slice %248 {offsets = [16, 0], sizes = [8, 128], strides = [1, 1]} : vector<32x128xf32> to vector<8x128xf32>
    %254 = arith.addf %252, %253 : vector<8x128xf32>
    %255 = vector.extract_strided_slice %248 {offsets = [24, 0], sizes = [8, 128], strides = [1, 1]} : vector<32x128xf32> to vector<8x128xf32>
    %256 = arith.addf %254, %255 : vector<8x128xf32>
    %c4_i32 = arith.constant 4 : i32
    %c0_40 = arith.constant 0 : index
    %c0_41 = arith.constant 0 : index
    %c0_42 = arith.constant 0 : index
    %257 = vector.load %arg3[%c0_40, %c0_41, %c0_42] : memref<1x8x128xf32, #tpu.memory_space<vmem>>, vector<1x8x128xf32>
    %258 = vector.shape_cast %257 : vector<1x8x128xf32> to vector<8x128xf32>
    %259 = vector.shape_cast %256 : vector<8x128xf32> to vector<1x8x128xf32>
    tpu.vector_store %arg3[%c0_40, %c0_41, %c0_42], %259 {strides = array<i32>} : memref<1x8x128xf32, #tpu.memory_space<vmem>>, vector<1x8x128xf32>,
    return
  }
  func.func @transform_0(%arg0: i32) -> (i32, i32) {
    %c0_i32 = arith.constant 0 : i32
    %c0_i32_0 = arith.constant 0 : i32
    return %arg0, %c0_i32 : i32, i32
  }
  func.func @transform_1(%arg0: i32) -> (i32, i32) {
    %c0_i32 = arith.constant 0 : i32
    %c0_i32_0 = arith.constant 0 : i32
    return %arg0, %c0_i32 : i32, i32
  }
  func.func @transform_2(%arg0: i32) -> (i32, i32, i32) {
    %c0_i32 = arith.constant 0 : i32
    %c0_i32_0 = arith.constant 0 : i32
    %c0_i32_1 = arith.constant 0 : i32
    return %arg0, %c0_i32, %c0_i32_0 : i32, i32, i32
  }
}

</mosaic_0001>

<bundles_post_ra>
// kernel: tpu_custom_call.1
= control target key start
LH: loop header
LB: loop body
LE: loop exit
PB: predicated region body
PF: predicated region fallthrough
CT: control target
= control target key end

     0   :  { %7 = vsyncpa [#allocation3], 0  ;;  %s2817_s0 = inlined_call_operand.hbm [shape: f32[384,384], index: 0, kind: input, shape index: {}]   ;;  %s2818_s1 = inlined_call_operand.vmem [shape: f32[384,1], index: 1, kind: input, shape index: {}]   ;;  %s2819_s2 = inlined_call_operand.hbm [shape: f32[3,8,128], index: 2, kind: output, shape index: {}]  }
   0x1   :  { %9 = vsyncpa [#allocation3 + $0x1], 0 }
   0x2   :  { %10 = vsyncpa [#allocation4], 0 }
   0x3   :  { %12 = vsyncpa [#allocation4 + $0x1], 0  ;;  %s1683_s9 = smov 0   ;;  %s1685_s10 = smov 0  }
   0x4   :  { %s1687_s11 = smov 0   ;;  %s1689_s12 = smov 0  }
   0x5 LB: > { %s1704_s13 = sadd.s32 4294967295, %s1661_s12   ;;  %s1261_s14 = sadd.s32 4294967294, %s1661_s12   ;;  %s1661_s12 = sphi %s1689_s12, %s2931_s12   ;;  %s1657_s11 = sphi %s1687_s11, %s2930_s11   ;;  %s1653_s10 = sphi %s1685_s10, %s2929_s10   ;;  %s1649_s9 = sphi %s1683_s9, %s2928_s9  }
   0x6   : > { %s1708_s15 = sadd.s32 1, %s1661_s12   ;;  %s25_s16 = sadd.s32 1, %s1657_s11 }
   0x7   : > { %s22_s17 = ssub.s32 %s1661_s12, %s1708_s15  ;;  %p32_p0 = scmp.ne.s32.totalorder %s1657_s11, %s1653_s10 }
   0x8   : > { %p23_p1 = scmp.eq.s32.totalorder %s22_s17, 0  ;;  %p33_p2 = scmp.eq.s32.totalorder %s1661_s12, 0 }
   0x9   : > { %p38_p3 = scmp.ne.s32.totalorder %s1653_s10, %s1649_s9  ;;  %p39_p4 = scmp.eq.s32.totalorder %s1704_s13, 0 }
   0xa   : > { %s1720_s18 = scalar_select %p23_p1, %s1657_s11, %s25_s16  }
   0xb   : > { %p34_p5 = por %p33_p2, %p32_p0  ;;  %p1722_p6 = por %p39_p4, %p38_p3 }
   0xc   : > { %p88_p7 = scmp.eq.s32.totalorder %s1704_s13, 2  ;;  %p94_p8 = scmp.eq.s32.totalorder %s1261_s14, 2 }
   0xd   : > { %s2822_s19 = scalar_select %p1722_p6, 1, 0 }
   0xe   : > { %p1338_p9 = scmp.lt.s32.totalorder %s1661_s12, 3  ;;  %p1728_p10 = por %p88_p7, %p32_p0 }
   0xf   : > { %p1732_p11 = por %p94_p8, %p38_p3  ;;  %s114_s22 = sand.u32 1, %s1657_s11  }
  0x10   : > { %s2823_s20 = scalar_select %p1728_p10, 1, 0 }
  0x11   : > { %s2824_s21 = scalar_select %p1732_p11, 1, 0 }
  0x12   : > { %s1324_s23 = smul.u32 6144, %s1661_s12  ;;  %p1743_p12 = pnand %p1338_p9, %p34_p5 }
  0x13   : > { %s1323_s24 = smul.u32 384, %s114_s22  ;;  %s1749_s3 = scalar_lea.sflag [#allocation3], %s114_s22 }
  0x14   : > { %s1741_s27 = scalar_lea.hbm %s2817_s0, %s1324_s23  ;;  %p1571_p0 = pneg %p1743_p12 }
  0x15   : > { %s118_s29 = scalar_lea.vmem [#allocation2], %s1323_s24  ;;  %s1569_s4 = scalar_lea.hbm %s1741_s27, 6144 }
  0x16   : > { %s126_s30 = sshll.u32 %s118_s29, 4  ;;  %p1570_p13 = scmp.ne.s32.totalorder %s1741_s27, %s1569_s4  ;;  %s1747_s30 = int_to_ptr.vmem [resolvable:$true] %s126_s30 }
  0x17   : > { %s1574_s7 = scalar_lea.hbm %s2817_s0, 18432  ;;  %p1575_p3 = scmp.lt.s32.totalorder %s1741_s27, %s2817_s0 }
  0x18   : > { %p1572_p1 = pnand %p1571_p0, %p1570_p13  ;;  %p1576_p4 = scmp.lt.s32.totalorder %s1574_s7, %s1569_s4 }
  0x1a   : > { %p1573_p2 = pneg %p1572_p1  ;;  %p1577_p5 = por %p1576_p4, %p1575_p3 }
  0x1c   : > { %p1578_p7 = pnand %p1577_p5, %p1573_p2 }
  0x1e   : > { %1581 = shalt.err (!%p1578_p7)
}
  0x1f   : > { %s1582_s16 = scalar_lea.vmem %s1747_s30, 6144  ;;  %s1663_s17 = smov [#allocation2]  }
  0x20   : > { %p1583_p8 = scmp.ne.s32.totalorder %s1747_s30, %s1582_s16  ;;  %s1587_s22 = sshll.u32 %s1663_s17, 4  ;;  %s1588_s22 = int_to_ptr.vmem [resolvable:$false] %s1587_s22 }
  0x21   : > { %s1589_s23 = scalar_lea.vmem %s1588_s22, 12288  ;;  %p1590_p1 = scmp.lt.s32.totalorder %s1747_s30, %s1588_s22 }
  0x22   : > { %p1585_p9 = pnand %p1583_p8, %p1571_p0  ;;  %p1591_p11 = scmp.lt.s32.totalorder %s1589_s23, %s1582_s16 }
  0x24   : > { %p1586_p13 = pneg %p1585_p9  ;;  %p1592_p10 = por %p1591_p11, %p1590_p1 }
  0x26   : > { %p1593_p6 = pnand %p1592_p10, %p1586_p13 }
  0x28   : > { %1596 = shalt.err (!%p1593_p6)
}
  0x29   : > { %s1664_s24 = smov 384   ;;  %s1665_s25 = smov 24  }
  0x2a   : > { %1333 = dma.hbm_to_vmem [thread:$0]  (!%p1743_p12), %s1741_s27, 6144, %s1747_s30, %s1749_s3, %s1664_s24, %s1664_s24, %s1665_s25  }
  0x2b   : > { %p1267_p0 = scmp.ge.s32.totalorder %s1661_s12, 1  ;;  %p143_p2 = scmp.lt.s32.totalorder %s1661_s12, 4 }
  0x2d   : > { %p144_p3 = pnand %p1267_p0, %p143_p2 }
  0x2e   : > { %s1773_s26 = sand.u32 (!%p144_p3), 1, %s1653_s10   ;;  %p2826_p6 = scmp.ne.s32.totalorder (!%p144_p3), %s2822_s19, 0 }
  0x2f   : > { %147 = sbr.rel (%p144_p3) target bundleno = 419 (0x1a3), region = 28  ;;  %s150_s4 = scalar_lea.sflag (!%p144_p3), [#allocation3], %s1773_s26 }
  0x30   : > { %s1325_s29 = smul.u32 (!%p144_p3), 384, %s1773_s26 }
  0x32   : > { %s1777_s5 = scalar_lea.vmem (!%p144_p3), [#allocation2], %s1325_s29 }
  0x34   : > { %1640 = dma.done.wait (%p2826_p6), %s150_s4, 6144  }
  0x35   : > { %1642 = vsyncadd (%p2826_p6), %s150_s4, 4294961152  ;;  %s1269_s27 = sshll.u32 %s1704_s13, 4  ;;  %v1666_v0 = vmov 0   ;;  %v193_v18 = vld [vmem:[%s1777_s5] sm:$0xff]  ;;  %v194_v20 = vld [vmem:[%s1777_s5 + $0x18] sm:$0xff]  ;;  %s1268_s19 = sshll.u32 %s1773_s26, 3 }
  0x36   : > { %1376 = vset.pattern.permute.xlu1 %v1666_v0  ;;  %1375 = vset.pattern.permute.xlu0 %v1666_v0  ;;  %p181_p10 = scmp.lt.s32.totalorder %s1269_s27, 47  ;;  %v195_v23 = vld [vmem:[%s1777_s5 + $0x30] sm:$0xff]  ;;  %v196_v27 = vld [vmem:[%s1777_s5 + $0x48] sm:$0xff]  ;;  %v287_v35 = vld [vmem:[%s1777_s5 + $0x38] sm:$0xff]  ;;  %s1320_s7 = sshll.u32 %s1704_s13, 7 }
  0x37   : > { %v285_v32 = vld [vmem:[%s1777_s5 + $0x8] sm:$0xff]  ;;  %v359_v38 = vld [vmem:[%s1777_s5 + $0x40] sm:$0xff]  ;;  %v357_v51 = vld [vmem:[%s1777_s5 + $0x10] sm:$0xff]  ;;  %s178_s8 = scalar_lea.vmem [#allocation5], %s1268_s19  ;;  %s1174_s22 = scalar_lea.hbm %s2819_s2, %s1320_s7 }
  0x38   : > { %s2933_s27 = smov (!%p181_p10, %s1269_s27), 47  ;;  %v286_v43 = vld [vmem:[%s1777_s5 + $0x20] sm:$0xff]  ;;  %v288_v53 = vld [vmem:[%s1777_s5 + $0x50] sm:$0xff]  ;;  %v360_v58 = vld [vmem:[%s1777_s5 + $0x58] sm:$0xff]  ;;  %s1176_s14 = sshll.u32 %s178_s8, 4  ;;  %s1177_s14 = int_to_ptr.vmem [resolvable:$true] %s1176_s14 }
  0x39   : > { %s1270_s28 = sshll.u32 %s2933_s27, 3  ;;  %s1163_s23 = scalar_lea.sflag [#allocation4], %s1773_s26 }
  0x3a   : > { %s184_s6 = scalar_lea.vmem %s2818_s1, %s1270_s28  ;;  %s1597_s24 = scalar_lea.vmem %s1177_s14, 128 }
  0x3b   : > { %v188_v1 = vld [vmem:[%s184_s6 + $0x10] sm:$0xff]  ;;  %v186_v2 = vld [vmem:[%s184_s6] sm:$0xff]  ;;  %v189_v3 = vld [vmem:[%s184_s6 + $0x18] sm:$0xff]  ;;  %p1598_p11 = scmp.ne.s32.totalorder %s1177_s14, %s1597_s24  ;;  %p2926_p12 = scmp.ne.s32.totalorder %s2823_s20, 0 }
  0x3c   : > { %209 = vperm.xlu1 %1376, %v188_v1   ;;  %199 = vperm.xlu0 %1375, %v186_v2   ;;  %v187_v4 = vld [vmem:[%s184_s6 + $0x8] sm:$0xff]  ;;  %v1271_v6 = vld [vmem:[%s184_s6 + $0x20] sm:$0xff]  ;;  %v1274_v7 = vld [vmem:[%s184_s6 + $0x38] sm:$0xff]  ;;  %s1667_s25 = smov [#allocation5]  }
  0x3d   : > { %v1272_v5 = vld [vmem:[%s184_s6 + $0x28] sm:$0xff]  ;;  %v1273_v8 = vld [vmem:[%s184_s6 + $0x30] sm:$0xff]  ;;  %v1287_v10 = vld [vmem:[%s184_s6 + $0x40] sm:$0xff]  ;;  %p1599_p4 = pnand %p1598_p11, %p2926_p12  ;;  %s1601_s29 = sshll.u32 %s1667_s25, 4  ;;  %s1602_s29 = int_to_ptr.vmem [resolvable:$false] %s1601_s29 }
  0x3e   : > { %v1288_v9 = vld [vmem:[%s184_s6 + $0x48] sm:$0xff]  ;;  %v1290_v11 = vld [vmem:[%s184_s6 + $0x58] sm:$0xff]  ;;  %v1289_v12 = vld [vmem:[%s184_s6 + $0x50] sm:$0xff]  ;;  %s1603_s13 = scalar_lea.vmem %s1602_s29, 256  ;;  %p1604_p7 = scmp.lt.s32.totalorder %s1177_s14, %s1602_s29 }
  0x3f   : > { %v1304_v13 = vld [vmem:[%s184_s6 + $0x68] sm:$0xff]  ;;  %v1303_v14 = vld [vmem:[%s184_s6 + $0x60] sm:$0xff]  ;;  %v1306_v15 = vld [vmem:[%s184_s6 + $0x78] sm:$0xff]  ;;  %p1600_p5 = pneg %p1599_p4  ;;  %p1605_p8 = scmp.lt.s32.totalorder %s1603_s13, %s1597_s24 }
  0x40   : > { %214 = vperm.xlu1 %1376, %v189_v3   ;;  %204 = vperm.xlu0 %1375, %v187_v4   ;;  %v1305_v16 = vld [vmem:[%s184_s6 + $0x70] sm:$0xff] }
  0x41   : > { %p1606_p9 = por %p1605_p8, %p1604_p7 }
  0x43   : > { %p1607_p13 = pnand %p1606_p9, %p1600_p5 }
  0x44   : > { %448 = vperm.xlu1 %1376, %v1272_v5   ;;  %443 = vperm.xlu0 %1375, %v1271_v6   ;;  %v358_v5 = vld [vmem:[%s1777_s5 + $0x28] sm:$0xff] }
  0x48   : > { %458 = vperm.xlu1 %1376, %v1274_v7   ;;  %453 = vperm.xlu0 %1375, %v1273_v8  }
  0x4c   : > { %692 = vperm.xlu1 %1376, %v1288_v9   ;;  %687 = vperm.xlu0 %1375, %v1287_v10  }
  0x50   : > { %702 = vperm.xlu1 %1376, %v1290_v11   ;;  %697 = vperm.xlu0 %1375, %v1289_v12  }
  0x54   : > { %936 = vperm.xlu1 %1376, %v1304_v13   ;;  %931 = vperm.xlu0 %1375, %v1303_v14   ;;  %v1276_v14 = vld [vmem:[%s1777_s5 + $0x78] sm:$0xff] }
  0x58   : > { %946 = vperm.xlu1 %1376, %v1306_v15   ;;  %941 = vperm.xlu0 %1375, %v1305_v16  }
  0xb7   : > { %v200_v17 = vpop.permute.xlu0 %199  ;;  %v210_v19 = vpop.permute.xlu1 %209 }
  0xb8   : > { %v1789_v22 = vsub.f32 %v200_v17, %v193_v18  ;;  %v1794_v25 = vsub.f32 %v210_v19, %v195_v23  ;;  %v1804_v37 = vsub.f32 %v200_v17, %v285_v32  ;;  %v1808_v42 = vsub.f32 %v210_v19, %v287_v35 }
  0xb9   : > { %v1811_v44 = vsub.f32 %v210_v19, %v359_v38  ;;  %v1821_v57 = vsub.f32 %v200_v17, %v357_v51 }
  0xba   : > { %v225_v26 = vand.u32 2147483647, %v1789_v22  ;;  %v227_v31 = vand.u32 2147483647, %v1794_v25  ;;  %v297_v45 = vand.u32 2147483647, %v1804_v37 }
  0xbb   : > { %v205_v21 = vpop.permute.xlu0 %204  ;;  %v215_v28 = vpop.permute.xlu1 %214  ;;  %v299_v49 = vand.u32 2147483647, %v1808_v42  ;;  %v371_v50 = vand.u32 2147483647, %v1811_v44  ;;  %v369_v1 = vand.u32 2147483647, %v1821_v57 }
  0xbc   : > { %v1792_v24 = vsub.f32 %v205_v21, %v194_v20  ;;  %v229_v33 = vsub.f32 0.0, %v225_v26  ;;  %v1801_v34 = vsub.f32 %v215_v28, %v196_v27  ;;  %v231_v39 = vsub.f32 0.0, %v227_v31  ;;  %v1280_v20 = vld [vmem:[%s1777_s5 + $0x80] sm:$0xff] }
  0xbd   : > { %v1814_v48 = vsub.f32 %v205_v21, %v286_v43  ;;  %v301_v52 = vsub.f32 0.0, %v297_v45  ;;  %v303_v56 = vsub.f32 0.0, %v299_v49  ;;  %v375_v59 = vsub.f32 0.0, %v371_v50 }
  0xbe   : > { %v226_v29 = vand.u32 2147483647, %v1792_v24  ;;  %v233_v40 = vmul.f32 1.442695, %v229_v33  ;;  %v228_v41 = vand.u32 2147483647, %v1801_v34  ;;  %v1824_v60 = vsub.f32 %v215_v28, %v288_v53 }
  0xbf   : > { %v237_v46 = vmul.f32 1.442695, %v231_v39  ;;  %v298_v55 = vand.u32 2147483647, %v1814_v48  ;;  %v305_v61 = vmul.f32 1.442695, %v301_v52  ;;  %v1826_v0 = vsub.f32 %v215_v28, %v360_v58  ;;  %v449_v15 = vpop.permute.xlu1 %448  ;;  %v1861_v43 = vpop.permute.xlu0 %443 }
  0xc0   : > { %v230_v30 = vsub.f32 0.0, %v226_v29  ;;  %v232_v47 = vsub.f32 0.0, %v228_v41  ;;  %v309_v63 = vmul.f32 1.442695, %v303_v56  ;;  %v381_v3 = vmul.f32 1.442695, %v375_v59 }
  0xc1   : > { %v302_v62 = vsub.f32 0.0, %v298_v55  ;;  %v300_v4 = vand.u32 2147483647, %v1824_v60  ;;  %v372_v8 = vand.u32 2147483647, %v1826_v0  ;;  %v373_v9 = vsub.f32 0.0, %v369_v1 }
  0xc2   : > { %v235_v36 = vmul.f32 1.442695, %v230_v30  ;;  %v239_v54 = vmul.f32 1.442695, %v232_v47  ;;  %v1837_v11 = vsub.f32 %v205_v21, %v358_v5  ;;  %v1845_v26 = vsub.f32 %v449_v15, %v1276_v14  ;;  %v1275_v41 = vld [vmem:[%s1777_s5 + $0x60] sm:$0xff] }
  0xc3   : > { %v307_v6 = vmul.f32 1.442695, %v302_v62  ;;  %v304_v12 = vsub.f32 0.0, %v300_v4  ;;  %v376_v17 = vsub.f32 0.0, %v372_v8  ;;  %v377_v18 = vmul.f32 1.442695, %v373_v9  ;;  %v1929_v50 = vpop.permute.xlu1 %458 }
  0xc4   : > { %1377 = vpow2.f32 %v235_v36  ;;  %v370_v19 = vand.u32 2147483647, %v1837_v11  ;;  %v223_v28 = vmin.f32 %v1794_v25, 0.0  ;;  %v1852_v31 = vsub.f32 %v449_v15, %v1280_v20  ;;  %v1284_v36 = vld [vmem:[%s1777_s5 + $0x88] sm:$0xff] }
  0xc5   : > { %1379 = vpow2.f32 %v233_v40  ;;  %v311_v23 = vmul.f32 1.442695, %v304_v12  ;;  %v383_v30 = vmul.f32 1.442695, %v376_v17  ;;  %v221_v33 = vmin.f32 %v1789_v22, 0.0 }
  0xc6   : > { %1381 = vpow2.f32 %v237_v46  ;;  %v374_v35 = vsub.f32 0.0, %v370_v19  ;;  %v293_v38 = vmin.f32 %v1804_v37, 0.0  ;;  %v470_v40 = vand.u32 2147483647, %v1845_v26 }
  0xc7   : > { %1383 = vpow2.f32 %v239_v54  ;;  %v224_v45 = vmin.f32 %v1801_v34, 0.0  ;;  %v542_v51 = vand.u32 2147483647, %v1852_v31  ;;  %v1870_v52 = vsub.f32 %v449_v15, %v1284_v36 }
  0xc8   : > { %1385 = vpow2.f32 %v305_v61  ;;  %v222_v54 = vmin.f32 %v1792_v24, 0.0  ;;  %v379_v56 = vmul.f32 1.442695, %v374_v35  ;;  %v1877_v58 = vsub.f32 %v1861_v43, %v1275_v41  ;;  %v1278_v61 = vld [vmem:[%s1777_s5 + $0xa8] sm:$0xff] }
  0xc9   : > { %1387 = vpow2.f32 %v309_v63  ;;  %v474_v63 = vsub.f32 0.0, %v470_v40  ;;  %v546_v9 = vsub.f32 0.0, %v542_v51  ;;  %v614_v12 = vand.u32 2147483647, %v1870_v52 }
  0xca   : > { %1389 = vpow2.f32 %v381_v3  ;;  %v469_v15 = vand.u32 2147483647, %v1877_v58 }
  0xcb   : > { %1391 = vpow2.f32 %v307_v6  ;;  %v1903_v51 = vmul.f32 1.442695, %v546_v9 }
  0xcc   : > { %v473_v5 = vsub.f32 0.0, %v469_v15 }
  0xd1   : > { %v1829_v2 = vpop.eup %1377 }
  0xd2   : > { %v1833_v7 = vpop.eup %1379  ;;  %v250_v10 = vadd.f32 1.0, %v1829_v2  ;;  %v253_v4 = vmul.f32 -0.5, %v1829_v2 }
  0xd3   : > { %v241_v13 = vadd.f32 1.0, %v1833_v7  ;;  %v1841_v16 = vpop.eup %1381  ;;  %v244_v14 = vmul.f32 -0.5, %v1833_v7  ;;  %v247_v9 = vand.u32 2147483647, %v1833_v7 }
  0xd4   : > { %1393 = vlog2.f32 %v250_v10  ;;  %v259_v21 = vadd.f32 1.0, %v1841_v16  ;;  %v1848_v27 = vpop.eup %1383  ;;  %v262_v59 = vmul.f32 -0.5, %v1841_v16  ;;  %v265_v19 = vand.u32 2147483647, %v1841_v16 }
  0xd5   : > { %1395 = vlog2.f32 %v241_v13  ;;  %v268_v46 = vadd.f32 1.0, %v1848_v27  ;;  %v1866_v49 = vpop.eup %1385  ;;  %vm1938_vm2 = vcmp.lt.f32.partialorder %v247_v9, 0.0004427343 }
  0xd6   : > { %1397 = vpow2.f32 %v377_v18  ;;  %v1872_v53 = vpop.eup %1387  ;;  %v313_v3 = vadd.f32 1.0, %v1866_v49  ;;  %v263_v18 = vadd.f32 1.0, %v262_v59  ;;  %v316_v59 = vmul.f32 -0.5, %v1866_v49 }
  0xd7   : > { %1399 = vpow2.f32 %v311_v23  ;;  %v1882_v1 = vpop.eup %1389  ;;  %v334_v8 = vmul.f32 -0.5, %v1872_v53  ;;  %v331_v13 = vadd.f32 1.0, %v1872_v53  ;;  %v1897_v23 = vmul.f32 1.442695, %v474_v63 }
  0xd8   : > { %1401 = vlog2.f32 %v259_v21  ;;  %v1887_v6 = vpop.eup %1391  ;;  %v403_v20 = vadd.f32 1.0, %v1882_v1  ;;  %v337_v21 = vand.u32 2147483647, %v1872_v53  ;;  %v406_v41 = vmul.f32 -0.5, %v1882_v1 }
  0xd9   : > { %1403 = vpow2.f32 %v383_v30  ;;  %v254_v30 = vadd.f32 1.0, %v253_v4  ;;  %v322_v35 = vadd.f32 1.0, %v1887_v6  ;;  %v335_v40 = vadd.f32 1.0, %v334_v8  ;;  %v1283_v4 = vld [vmem:[%s1777_s5 + $0x70] sm:$0xff] }
  0xda   : > { %1405 = vlog2.f32 %v268_v46  ;;  %v256_v46 = vand.u32 2147483647, %v1829_v2  ;;  %vm1911_vm0 = vcmp.lt.f32.partialorder %v265_v19, 0.0004427343  ;;  %v409_v8 = vand.u32 2147483647, %v1882_v1 }
  0xdb   : > { %1407 = vpow2.f32 %v379_v56  ;;  %v245_v56 = vadd.f32 1.0, %v244_v14  ;;  %v271_v19 = vmul.f32 -0.5, %v1848_v27  ;;  %vm2010_vm5 = vcmp.lt.f32.partialorder %v337_v21, 0.0004427343 }
  0xdc   : > { %1409 = vlog2.f32 %v313_v3  ;;  %v1909_v3 = vmul.f32 %v1841_v16, %v263_v18  ;;  %v1921_v16 = vmul.f32 %v1872_v53, %v335_v40  ;;  %v407_v18 = vadd.f32 1.0, %v406_v41  ;;  %v1279_v40 = vld [vmem:[%s1777_s5 + $0x68] sm:$0xff] }
  0xdd   : > { %1411 = vlog2.f32 %v331_v13  ;;  %vm1924_vm1 = vcmp.lt.f32.partialorder %v256_v46, 0.0004427343  ;;  %v319_v46 = vand.u32 2147483647, %v1866_v49  ;;  %vm2028_vm6 = vcmp.lt.f32.partialorder %v409_v8, 0.0004427343 }
  0xde   : > { %1413 = vlog2.f32 %v403_v20  ;;  %v1951_v9 = vmul.f32 %v1882_v1, %v407_v18 }
  0xdf   : > { %1415 = vlog2.f32 %v322_v35  ;;  %vm1970_vm3 = vcmp.lt.f32.partialorder %v319_v46, 0.0004427343  ;;  %v618_v46 = vsub.f32 0.0, %v614_v12 }
  0xe1   : > { %v1394_v17 = vpop.eup %1393 }
  0xe2   : > { %v1396_v36 = vpop.eup %1395  ;;  %v252_v63 = vmul.f32 0.6931472, %v1394_v17  ;;  %v255_v17 = vmul.f32 %v1829_v2, %v254_v30  ;;  %v246_v2 = vmul.f32 %v1833_v7, %v245_v56  ;;  %v317_v30 = vadd.f32 1.0, %v316_v59 }
  0xe3   : > { %v1906_v10 = vpop.eup %1397  ;;  %v243_v14 = vmul.f32 0.6931472, %v1396_v36  ;;  %v477_v56 = vmul.f32 1.442695, %v473_v5  ;;  %v1948_v59 = vsub.f32 %v1929_v50, %v1278_v61  ;;  %v1961_v5 = vsub.f32 %v1861_v43, %v1279_v40  ;;  %v1277_v61 = vld [vmem:[%s1777_s5 + $0x90] sm:$0xff] }
  0xe4   : > { %v1917_v13 = vpop.eup %1399  ;;  %v385_v15 = vadd.f32 1.0, %v1906_v10  ;;  %v258_v35 = vsel %vm1924_vm1, %v255_v17, %v252_v63  ;;  %v388_v39 = vmul.f32 -0.5, %v1906_v10  ;;  %v272_v17 = vadd.f32 1.0, %v271_v19 }
  0xe5   : > { %v1402_v62 = vpop.eup %1401  ;;  %v340_v47 = vadd.f32 1.0, %v1917_v13  ;;  %v249_v7 = vsel %vm1938_vm2, %v246_v2, %v243_v14  ;;  %v278_v29 = vsub.f32 %v222_v54, %v258_v35  ;;  %v1957_v55 = vmul.f32 %v1866_v49, %v317_v30  ;;  %v1964_v14 = vpop.permute.xlu0 %453 }
  0xe6   : > { %v1931_v36 = vpop.eup %1403  ;;  %v261_v32 = vmul.f32 0.6931472, %v1402_v62  ;;  %1417 = vlog2.f32 %v385_v15  ;;  %v391_v62 = vand.u32 2147483647, %v1906_v10  ;;  %v277_v19 = vsub.f32 %v221_v33, %v249_v7 }
  0xe7   : > { %v1406_v63 = vpop.eup %1405  ;;  %v412_v20 = vadd.f32 1.0, %v1931_v36  ;;  %v389_v49 = vadd.f32 1.0, %v388_v39  ;;  %v274_v54 = vand.u32 2147483647, %v1848_v27  ;;  %1419 = vlog2.f32 %v340_v47 }
  0xe8   : > { %v1966_v18 = vpop.eup %1407  ;;  %v267_v2 = vsel %vm1911_vm0, %v1909_v3, %v261_v32  ;;  %v270_v30 = vmul.f32 0.6931472, %v1406_v63  ;;  %1421 = vpow2.f32 %v477_v56  ;;  %v472_v15 = vand.u32 2147483647, %v1948_v59 }
  0xe9   : > { %v1410_v35 = vpop.eup %1409  ;;  %v273_v22 = vmul.f32 %v1848_v27, %v272_v17  ;;  %1423 = vlog2.f32 %v412_v20  ;;  %v282_v33 = vadd.f32 %v278_v29, %v277_v19  ;;  %v1981_v40 = vsub.f32 %v1964_v14, %v1277_v61  ;;  %v1281_v19 = vld [vmem:[%s1777_s5 + $0x98] sm:$0xff] }
  0xea   : > { %v325_v39 = vmul.f32 -0.5, %v1887_v6  ;;  %v394_v47 = vadd.f32 1.0, %v1966_v18  ;;  %1425 = vpow2.f32 %v1897_v23  ;;  %v541_v32 = vand.u32 2147483647, %v1961_v5  ;;  %v1412_v3 = vpop.eup %1411 }
  0xeb   : > { %v279_v41 = vsub.f32 %v223_v28, %v267_v2  ;;  %vm1990_vm4 = vcmp.lt.f32.partialorder %v274_v54, 0.0004427343  ;;  %v343_v29 = vmul.f32 -0.5, %v1917_v13  ;;  %v1414_v7 = vpop.eup %1413  ;;  %v315_v56 = vmul.f32 0.6931472, %v1410_v35 }
  0xec   : > { %v1998_v23 = vmul.f32 %v1906_v10, %v389_v49  ;;  %v276_v63 = vsel %vm1990_vm4, %v273_v22, %v270_v30  ;;  %v476_v17 = vsub.f32 0.0, %v472_v15  ;;  %v1416_v25 = vpop.eup %1415  ;;  %v346_v28 = vand.u32 2147483647, %v1917_v13 }
  0xed   : > { %v283_v20 = vadd.f32 %v282_v33, %v279_v41  ;;  %v2004_v61 = vsub.f32 %v1861_v43, %v1283_v4  ;;  %v471_v12 = vand.u32 2147483647, %v1981_v40  ;;  %v415_v54 = vmul.f32 -0.5, %v1931_v36  ;;  %v1282_v33 = vld [vmem:[%s1777_s5 + $0xb0] sm:$0xff] }
  0xee   : > { %v326_v2 = vadd.f32 1.0, %v325_v39  ;;  %1427 = vlog2.f32 %v394_v47  ;;  %v545_v30 = vsub.f32 0.0, %v541_v32  ;;  %v280_v15 = vsub.f32 %v224_v45, %v276_v63 }
  0xef   : > { %v344_v35 = vadd.f32 1.0, %v343_v29  ;;  %v328_v43 = vand.u32 2147483647, %v1887_v6  ;;  %v623_v22 = vmul.f32 1.442695, %v618_v46  ;;  %v321_v53 = vsel %vm1970_vm3, %v1957_v55, %v315_v56 }
  0xf0   : > { %v324_v21 = vmul.f32 0.6931472, %v1416_v25  ;;  %v483_v4 = vmul.f32 1.442695, %v476_v17  ;;  %v2023_v41 = vsub.f32 %v1964_v14, %v1281_v19  ;;  %v333_v39 = vmul.f32 0.6931472, %v1412_v3 }
  0xf1   : > { %v284_v47 = vadd.f32 %v283_v20, %v280_v15  ;;  %v613_v32 = vand.u32 2147483647, %v2004_v61  ;;  %v475_v34 = vsub.f32 0.0, %v471_v12  ;;  %v327_v24 = vmul.f32 %v1887_v6, %v326_v2 }
  0xf2   : > { %1429 = vpow2.f32 %v1903_v51  ;;  %v549_v55 = vmul.f32 1.442695, %v545_v30  ;;  %v2035_v27 = vsub.f32 %v1929_v50, %v1282_v33  ;;  %v349_v29 = vsub.f32 %v293_v38, %v321_v53  ;;  %v1286_v38 = vld [vmem:[%s1777_s5 + $0xb8] sm:$0xff] }
  0xf3   : > { %v1418_v3 = vpop.eup %1417  ;;  %vm2039_vm7 = vcmp.lt.f32.partialorder %v328_v43, 0.0004427343  ;;  %1431 = vpow2.f32 %v623_v22  ;;  %v481_v1 = vmul.f32 1.442695, %v475_v34  ;;  %vm2045_vm8 = vcmp.lt.f32.partialorder %v391_v62, 0.0004427343 }
  0xf4   : > { %v1420_v8 = vpop.eup %1419  ;;  %vm2049_vm9 = vcmp.lt.f32.partialorder %v346_v28, 0.0004427343  ;;  %v330_v37 = vsel %vm2039_vm7, %v327_v24, %v324_v21  ;;  %1433 = vpow2.f32 %v483_v4  ;;  %v543_v56 = vand.u32 2147483647, %v2023_v41 }
  0xf5   : > { %v2057_v63 = vpop.eup %1421  ;;  %v418_v17 = vand.u32 2147483647, %v1931_v36  ;;  %v353_v10 = vadd.f32 %v349_v29, %v284_v47  ;;  %v617_v62 = vsub.f32 0.0, %v613_v32  ;;  %1435 = vpow2.f32 %v481_v1 }
  0xf6   : > { %v1424_v25 = vpop.eup %1423  ;;  %v345_v28 = vmul.f32 %v1917_v13, %v344_v35  ;;  %v416_v20 = vadd.f32 1.0, %v415_v54  ;;  %1437 = vpow2.f32 %v549_v55  ;;  %v544_v19 = vand.u32 2147483647, %v2035_v27 }
  0xf7   : > { %v2062_v12 = vpop.eup %1425  ;;  %v339_v2 = vsel %vm2010_vm5, %v1921_v16, %v333_v39  ;;  %v405_v30 = vmul.f32 0.6931472, %v1414_v7  ;;  %v2847_v15 = vmin.f32 %v1814_v48, 0.0  ;;  %v2070_v22 = vsub.f32 %v1929_v50, %v1286_v38  ;;  %v1292_v7 = vld [vmem:[%s1777_s5 + $0xd8] sm:$0xff] }
  0xf8   : > { %v342_v33 = vmul.f32 0.6931472, %v1420_v8  ;;  %v397_v13 = vmul.f32 -0.5, %v1966_v18  ;;  %v485_v54 = vadd.f32 1.0, %v2057_v63  ;;  %v547_v35 = vsub.f32 0.0, %v543_v56 }
  0xf9   : > { %v350_v43 = vsub.f32 %v2847_v15, %v330_v37  ;;  %v387_v53 = vmul.f32 0.6931472, %v1418_v3  ;;  %v414_v21 = vmul.f32 0.6931472, %v1424_v25  ;;  %v621_v47 = vmul.f32 1.442695, %v617_v62 }
  0xfa   : > { %v417_v16 = vmul.f32 %v1931_v36, %v416_v20  ;;  %vm2075_vm10 = vcmp.lt.f32.partialorder %v418_v17, 0.0004427343  ;;  %v494_v48 = vadd.f32 1.0, %v2062_v12  ;;  %v548_v50 = vsub.f32 0.0, %v544_v19  ;;  %v1285_v36 = vld [vmem:[%s1777_s5 + $0xa0] sm:$0xff] }
  0xfb   : > { %v354_v4 = vadd.f32 %v353_v10, %v350_v43  ;;  %v1428_v49 = vpop.eup %1427  ;;  %v2850_v39 = vmin.f32 %v1808_v42, 0.0  ;;  %v411_v34 = vsel %vm2028_vm6, %v1951_v9, %v405_v30  ;;  %v400_v24 = vand.u32 2147483647, %v1966_v18 }
  0xfc   : > { %v616_v55 = vand.u32 2147483647, %v2070_v22  ;;  %v348_v3 = vsel %vm2049_vm9, %v345_v28, %v342_v33  ;;  %v398_v29 = vadd.f32 1.0, %v397_v13  ;;  %1439 = vlog2.f32 %v485_v54 }
  0xfd   : > { %v351_v32 = vsub.f32 %v2850_v39, %v339_v2  ;;  %v553_v46 = vmul.f32 1.442695, %v547_v35  ;;  %v393_v42 = vsel %vm2045_vm8, %v1998_v23, %v387_v53  ;;  %v420_v1 = vsel %vm2075_vm10, %v417_v16, %v414_v21 }
  0xfe   : > { %1441 = vpow2.f32 %v621_v47  ;;  %v396_v9 = vmul.f32 0.6931472, %v1428_v49  ;;  %v555_v8 = vmul.f32 1.442695, %v548_v50  ;;  %v2096_v37 = vsub.f32 %v1964_v14, %v1285_v36 }
  0xff   : > { %v355_v45 = vadd.f32 %v354_v4, %v351_v32  ;;  %1443 = vlog2.f32 %v494_v48  ;;  %v2098_v51 = vpop.eup %1429  ;;  %v2851_v38 = vmin.f32 %v1811_v44, 0.0  ;;  %v2852_v6 = vmin.f32 %v1824_v60, 0.0  ;;  %v2140_v48 = vpop.permute.xlu1 %692 }
 0x100   : > { %v465_v17 = vmin.f32 %v1877_v58, 0.0  ;;  %v620_v10 = vsub.f32 0.0, %v616_v55  ;;  %v2107_v62 = vpop.eup %1431  ;;  %v2853_v25 = vmin.f32 %v1821_v57, 0.0  ;;  %v399_v14 = vmul.f32 %v1966_v18, %v398_v29 }
 0x101   : > { %v2102_v56 = vsub.f32 %v2851_v38, %v411_v34  ;;  %v352_v23 = vsub.f32 %v2852_v6, %v348_v3  ;;  %vm2112_vm11 = vcmp.lt.f32.partialorder %v400_v24, 0.0004427343  ;;  %1445 = vpow2.f32 %v553_v46  ;;  %v2116_v44 = vpop.eup %1433  ;;  %v1291_v34 = vld [vmem:[%s1777_s5 + $0xc0] sm:$0xff]  ;;  %v2146_v24 = vpop.permute.xlu0 %687 }
 0x102   : > { %v421_v28 = vsub.f32 %v2853_v25, %v393_v42  ;;  %v2856_v60 = vmin.f32 %v1826_v0, 0.0  ;;  %v537_v30 = vmin.f32 %v1961_v5, 0.0  ;;  %v609_v57 = vmin.f32 %v2004_v61, 0.0  ;;  %v2124_v15 = vpop.eup %1435 }
 0x103   : > { %v356_v2 = vadd.f32 %v355_v45, %v352_v23  ;;  %v402_v18 = vsel %vm2112_vm11, %v399_v14, %v396_v9  ;;  %v497_v43 = vmul.f32 -0.5, %v2062_v12  ;;  %1447 = vpow2.f32 %v555_v8  ;;  %v2130_v0 = vpop.eup %1437 }
 0x104   : > { %v2120_v19 = vsub.f32 %v2856_v60, %v420_v1  ;;  %v615_v33 = vand.u32 2147483647, %v2096_v37  ;;  %v569_v13 = vmul.f32 -0.5, %v2098_v51  ;;  %v468_v54 = vmin.f32 %v1948_v59, 0.0 }
 0x105   : > { %v627_v35 = vmul.f32 1.442695, %v620_v10  ;;  %v503_v53 = vadd.f32 1.0, %v2124_v15  ;;  %v500_v21 = vand.u32 2147483647, %v2062_v12  ;;  %v641_v4 = vmul.f32 -0.5, %v2107_v62 }
 0x106   : > { %v512_v47 = vadd.f32 1.0, %v2116_v44  ;;  %v540_v16 = vmin.f32 %v2035_v27, 0.0  ;;  %v2857_v50 = vmin.f32 %v1837_v11, 0.0  ;;  %v425_v39 = vadd.f32 %v421_v28, %v356_v2 }
 0x107   : > { %v566_v32 = vadd.f32 1.0, %v2098_v51  ;;  %1449 = vlog2.f32 %v503_v53  ;;  %v498_v55 = vadd.f32 1.0, %v497_v43  ;;  %v488_v36 = vmul.f32 -0.5, %v2057_v63 }
 0x108   : > { %v422_v49 = vsub.f32 %v2857_v50, %v402_v18  ;;  %v557_v3 = vadd.f32 1.0, %v2130_v0  ;;  %v619_v29 = vsub.f32 0.0, %v615_v33  ;;  %v570_v46 = vadd.f32 1.0, %v569_v13 }
 0x109   : > { %v638_v42 = vadd.f32 1.0, %v2107_v62  ;;  %1451 = vpow2.f32 %v627_v35  ;;  %v2152_v11 = vsub.f32 %v2140_v48, %v1292_v7  ;;  %v642_v1 = vadd.f32 1.0, %v641_v4  ;;  %v1440_v8 = vpop.eup %1439 }
 0x10a   : > { %1453 = vlog2.f32 %v512_v47  ;;  %v612_v45 = vmin.f32 %v2070_v22, 0.0  ;;  %v2156_v9 = vsub.f32 %v2146_v24, %v1291_v34  ;;  %v426_v38 = vadd.f32 %v425_v39, %v422_v49  ;;  %v1296_v39 = vld [vmem:[%s1777_s5 + $0xe0] sm:$0xff] }
 0x10b   : > { %vm2158_vm12 = vcmp.lt.f32.partialorder %v500_v21, 0.0004427343  ;;  %1455 = vlog2.f32 %v566_v32  ;;  %v572_v23 = vand.u32 2147483647, %v2098_v51  ;;  %v491_v10 = vand.u32 2147483647, %v2057_v63  ;;  %v2164_v25 = vpop.eup %1441 }
 0x10c   : > { %v2167_v28 = vmul.f32 %v2062_v12, %v498_v55  ;;  %v489_v14 = vadd.f32 1.0, %v488_v36  ;;  %1457 = vlog2.f32 %v557_v3  ;;  %v625_v20 = vmul.f32 1.442695, %v619_v29  ;;  %v1444_v60 = vpop.eup %1443 }
 0x10d   : > { %v2170_v2 = vmul.f32 %v2098_v51, %v570_v46  ;;  %1459 = vlog2.f32 %v638_v42  ;;  %v644_v18 = vand.u32 2147483647, %v2107_v62  ;;  %v714_v43 = vand.u32 2147483647, %v2152_v11  ;;  %v1295_v46 = vld [vmem:[%s1777_s5 + $0xc8] sm:$0xff] }
 0x10e   : > { %v2175_v33 = vmul.f32 %v2107_v62, %v642_v1  ;;  %v487_v13 = vmul.f32 0.6931472, %v1440_v8  ;;  %v560_v12 = vmul.f32 -0.5, %v2130_v0  ;;  %v713_v35 = vand.u32 2147483647, %v2156_v9  ;;  %v2179_v53 = vpop.eup %1445 }
 0x10f   : > { %v427_v21 = vadd.f32 %v426_v38, %v2102_v56  ;;  %vm2182_vm13 = vcmp.lt.f32.partialorder %v491_v10, 0.0004427343  ;;  %v629_v4 = vadd.f32 1.0, %v2164_v25  ;;  %v632_v47 = vmul.f32 -0.5, %v2164_v25  ;;  %v1294_v10 = vld [vmem:[%s1777_s5 + $0x108] sm:$0xff] }
 0x110   : > { %v496_v7 = vmul.f32 0.6931472, %v1444_v60  ;;  %v490_v50 = vmul.f32 %v2057_v63, %v489_v14  ;;  %v506_v49 = vmul.f32 -0.5, %v2124_v15  ;;  %1461 = vpow2.f32 %v625_v20  ;;  %v2191_v32 = vpop.eup %1447  ;;  %v2205_v14 = vpop.permute.xlu1 %702 }
 0x111   : > { %v563_v56 = vand.u32 2147483647, %v2130_v0  ;;  %v635_v34 = vand.u32 2147483647, %v2164_v25  ;;  %v467_v55 = vmin.f32 %v1981_v40, 0.0  ;;  %v718_v36 = vsub.f32 0.0, %v714_v43 }
 0x112   : > { %v493_v3 = vsel %vm2182_vm13, %v490_v50, %v487_v13  ;;  %v561_v29 = vadd.f32 1.0, %v560_v12  ;;  %v575_v63 = vadd.f32 1.0, %v2179_v53  ;;  %v717_v42 = vsub.f32 0.0, %v713_v35  ;;  %v1300_v12 = vld [vmem:[%s1777_s5 + $0xe8] sm:$0xff]  ;;  %v1298_v50 = vld [vmem:[%s1777_s5 + $0x110] sm:$0xff] }
 0x113   : > { %v428_v1 = vadd.f32 %v427_v21, %v2120_v19  ;;  %1463 = vlog2.f32 %v629_v4  ;;  %v633_v8 = vadd.f32 1.0, %v632_v47  ;;  %v2202_v38 = vsub.f32 %v2140_v48, %v1296_v39 }
 0x114   : > { %v1450_v40 = vpop.eup %1449  ;;  %v502_v20 = vsel %vm2158_vm12, %v2167_v28, %v496_v7  ;;  %v515_v60 = vmul.f32 -0.5, %v2116_v44  ;;  %v584_v43 = vadd.f32 1.0, %v2191_v32  ;;  %v507_v13 = vadd.f32 1.0, %v506_v49 }
 0x115   : > { %v521_v19 = vsub.f32 %v465_v17, %v493_v3  ;;  %v509_v35 = vand.u32 2147483647, %v2124_v15  ;;  %v723_v21 = vmul.f32 1.442695, %v718_v36  ;;  %v2217_v51 = vsub.f32 %v2146_v24, %v1295_v46 }
 0x116   : > { %v2219_v4 = vpop.eup %1451  ;;  %vm2221_vm14 = vcmp.lt.f32.partialorder %v572_v23, 0.0004427343  ;;  %v505_v28 = vmul.f32 0.6931472, %v1450_v40  ;;  %1465 = vlog2.f32 %v575_v63  ;;  %v721_v47 = vmul.f32 1.442695, %v717_v42 }
 0x117   : > { %v2226_v7 = vsub.f32 %v2205_v14, %v1294_v10  ;;  %v1454_v58 = vpop.eup %1453  ;;  %v525_v17 = vadd.f32 %v521_v19, %v428_v1  ;;  %vm2228_vm15 = vcmp.lt.f32.partialorder %v563_v56, 0.0004427343  ;;  %v518_v49 = vand.u32 2147483647, %v2116_v44 }
 0x118   : > { %v786_v39 = vand.u32 2147483647, %v2202_v38  ;;  %v2235_v23 = vsub.f32 %v2140_v48, %v1300_v12  ;;  %v1456_v36 = vpop.eup %1455  ;;  %v2866_v3 = vmin.f32 %v1845_v26, 0.0  ;;  %v516_v46 = vadd.f32 1.0, %v515_v60  ;;  %v1293_v60 = vld [vmem:[%s1777_s5 + $0xf0] sm:$0xff] }
 0x119   : > { %1467 = vlog2.f32 %v584_v43  ;;  %v508_v42 = vmul.f32 %v2124_v15, %v507_v13  ;;  %v1458_v56 = vpop.eup %1457  ;;  %v656_v1 = vadd.f32 1.0, %v2219_v4  ;;  %vm2241_vm0 = vcmp.lt.f32.partialorder %v509_v35, 0.0004427343  ;;  %v2250_v15 = vpop.permute.xlu0 %697 }
 0x11a   : > { %v522_v63 = vsub.f32 %v2866_v3, %v502_v20  ;;  %1469 = vpow2.f32 %v723_v21  ;;  %v785_v48 = vand.u32 2147483647, %v2217_v51  ;;  %v1460_v40 = vpop.eup %1459  ;;  %v514_v12 = vmul.f32 0.6931472, %v1454_v58 }
 0x11b   : > { %v511_v26 = vsel %vm2241_vm0, %v508_v42, %v505_v28  ;;  %1471 = vpow2.f32 %v721_v47  ;;  %v716_v20 = vand.u32 2147483647, %v2226_v7  ;;  %v568_v43 = vmul.f32 0.6931472, %v1456_v36 }
 0x11c   : > { %v526_v13 = vadd.f32 %v525_v17, %v522_v63  ;;  %v790_v19 = vsub.f32 0.0, %v786_v39  ;;  %v858_v35 = vand.u32 2147483647, %v2235_v23  ;;  %v559_v21 = vmul.f32 0.6931472, %v1458_v56 }
 0x11d   : > { %v562_v3 = vmul.f32 %v2130_v0, %v561_v29  ;;  %v2255_v58 = vmul.f32 %v2164_v25, %v633_v8  ;;  %v517_v28 = vmul.f32 %v2116_v44, %v516_v46  ;;  %v2258_v47 = vpop.eup %1461  ;;  %vm2260_vm1 = vcmp.lt.f32.partialorder %v518_v49, 0.0004427343  ;;  %v1299_v29 = vld [vmem:[%s1777_s5 + $0xd0] sm:$0xff] }
 0x11e   : > { %v523_v36 = vsub.f32 %v467_v55, %v511_v26  ;;  %v789_v10 = vsub.f32 0.0, %v785_v48  ;;  %v2265_v17 = vsub.f32 %v2250_v15, %v1293_v60  ;;  %1473 = vlog2.f32 %v656_v1 }
 0x11f   : > { %v520_v39 = vsel %vm2260_vm1, %v517_v28, %v514_v12  ;;  %v539_v0 = vmin.f32 %v2023_v41, 0.0  ;;  %v720_v44 = vsub.f32 0.0, %v716_v20  ;;  %v574_v8 = vsel %vm2221_vm14, %v2170_v2, %v568_v43  ;;  %v1301_v41 = vld [vmem:[%s1777_s5 + $0x100] sm:$0xff] }
 0x120   : > { %v527_v49 = vadd.f32 %v526_v13, %v523_v36  ;;  %v795_v63 = vmul.f32 1.442695, %v790_v19  ;;  %v862_v55 = vsub.f32 0.0, %v858_v35  ;;  %v1464_v46 = vpop.eup %1463  ;;  %v565_v56 = vsel %vm2228_vm15, %v562_v3, %v559_v21  ;;  %v1297_v35 = vld [vmem:[%s1777_s5 + $0xf8] sm:$0xff] }
 0x121   : > { %v578_v48 = vmul.f32 -0.5, %v2179_v53  ;;  %v611_v1 = vmin.f32 %v2096_v37, 0.0  ;;  %v647_v12 = vadd.f32 1.0, %v2258_v47  ;;  %vm2281_vm2 = vcmp.lt.f32.partialorder %v644_v18, 0.0004427343 }
 0x122   : > { %v524_v2 = vsub.f32 %v468_v54, %v520_v39  ;;  %v793_v6 = vmul.f32 1.442695, %v789_v10  ;;  %v2288_v20 = vsub.f32 %v2146_v24, %v1299_v29  ;;  %v715_v60 = vand.u32 2147483647, %v2265_v17 }
 0x123   : > { %v2873_v43 = vmin.f32 %v1852_v31, 0.0  ;;  %v640_v19 = vmul.f32 0.6931472, %v1460_v40  ;;  %v587_v62 = vmul.f32 -0.5, %v2191_v32  ;;  %v727_v18 = vmul.f32 1.442695, %v720_v44  ;;  %v1466_v21 = vpop.eup %1465 }
 0x124   : > { %v593_v59 = vsub.f32 %v537_v30, %v565_v56  ;;  %v528_v54 = vadd.f32 %v527_v49, %v524_v2  ;;  %1475 = vpow2.f32 %v795_v63  ;;  %v867_v3 = vmul.f32 1.442695, %v862_v55 }
 0x125   : > { %v594_v13 = vsub.f32 %v2873_v43, %v574_v8  ;;  %vm2300_vm3 = vcmp.lt.f32.partialorder %v635_v34, 0.0004427343  ;;  %v579_v31 = vadd.f32 1.0, %v578_v48  ;;  %v581_v40 = vand.u32 2147483647, %v2179_v53 }
 0x126   : > { %1477 = vlog2.f32 %v647_v12  ;;  %v2306_v28 = vsub.f32 %v2205_v14, %v1298_v50  ;;  %v1468_v42 = vpop.eup %1467  ;;  %v857_v5 = vand.u32 2147483647, %v2288_v20  ;;  %v719_v30 = vsub.f32 0.0, %v715_v60 }
 0x127   : > { %1479 = vpow2.f32 %v793_v6  ;;  %v2310_v36 = vsub.f32 %v2250_v15, %v1297_v35  ;;  %v2312_v25 = vpop.eup %1469  ;;  %v590_v34 = vand.u32 2147483647, %v2191_v32  ;;  %v577_v10 = vmul.f32 0.6931472, %v1466_v21 }
 0x128   : > { %v710_v39 = vmin.f32 %v2152_v11, 0.0  ;;  %1481 = vpow2.f32 %v727_v18  ;;  %v2316_v29 = vpop.eup %1471  ;;  %v631_v44 = vmul.f32 0.6931472, %v1464_v46  ;;  %v588_v8 = vadd.f32 1.0, %v587_v62 }
 0x129   : > { %v659_v49 = vmul.f32 -0.5, %v2219_v4  ;;  %v597_v63 = vadd.f32 %v593_v59, %v528_v54  ;;  %v580_v55 = vmul.f32 %v2179_v53, %v579_v31  ;;  %vm2320_vm4 = vcmp.lt.f32.partialorder %v581_v40, 0.0004427343 }
 0x12a   : > { %1483 = vpow2.f32 %v867_v3  ;;  %v788_v48 = vand.u32 2147483647, %v2306_v28  ;;  %v738_v12 = vadd.f32 1.0, %v2312_v25  ;;  %v861_v2 = vsub.f32 0.0, %v857_v5 }
 0x12b   : > { %v725_v6 = vmul.f32 1.442695, %v719_v30  ;;  %v787_v50 = vand.u32 2147483647, %v2310_v36  ;;  %v646_v46 = vsel %vm2281_vm2, %v2175_v33, %v640_v19  ;;  %v586_v60 = vmul.f32 0.6931472, %v1468_v42  ;;  %v1474_v62 = vpop.eup %1473 }
 0x12c   : > { %v583_v53 = vsel %vm2320_vm4, %v580_v55, %v577_v10  ;;  %v729_v43 = vadd.f32 1.0, %v2316_v29  ;;  %vm2333_vm5 = vcmp.lt.f32.partialorder %v590_v34, 0.0004427343  ;;  %v598_v35 = vadd.f32 %v597_v63, %v594_v13  ;;  %v2420_v10 = vpop.permute.xlu1 %936 }
 0x12d   : > { %1485 = vpow2.f32 %v725_v6  ;;  %v791_v21 = vsub.f32 0.0, %v787_v50  ;;  %v589_v59 = vmul.f32 %v2191_v32, %v588_v8  ;;  %v660_v54 = vadd.f32 1.0, %v659_v49  ;;  %v1302_v8 = vld [vmem:[%s1777_s5 + $0x118] sm:$0xff] }
 0x12e   : > { %v662_v33 = vand.u32 2147483647, %v2219_v4  ;;  %v792_v26 = vsub.f32 0.0, %v788_v48  ;;  %v637_v19 = vsel %vm2300_vm3, %v2255_v58, %v631_v44  ;;  %v595_v3 = vsub.f32 %v539_v0, %v583_v53 }
 0x12f   : > { %1487 = vlog2.f32 %v738_v12  ;;  %v865_v31 = vmul.f32 1.442695, %v861_v2  ;;  %v592_v13 = vsel %vm2333_vm5, %v589_v59, %v586_v60  ;;  %v658_v40 = vmul.f32 0.6931472, %v1474_v62 }
 0x130   : > { %1489 = vlog2.f32 %v729_v43  ;;  %v797_v32 = vmul.f32 1.442695, %v791_v21  ;;  %v2880_v42 = vmin.f32 %v1870_v52, 0.0  ;;  %v599_v30 = vadd.f32 %v598_v35, %v595_v3  ;;  %v2401_v3 = vpop.permute.xlu0 %931 }
 0x131   : > { %v650_v24 = vmul.f32 -0.5, %v2258_v47  ;;  %v782_v58 = vmin.f32 %v2202_v38, 0.0  ;;  %v2353_v0 = vpop.eup %1475  ;;  %v661_v34 = vmul.f32 %v2219_v4, %v660_v54  ;;  %vm2356_vm6 = vcmp.lt.f32.partialorder %v662_v33, 0.0004427343 }
 0x132   : > { %v2348_v5 = vsub.f32 %v2880_v42, %v646_v46  ;;  %v741_v44 = vmul.f32 -0.5, %v2312_v25  ;;  %v799_v52 = vmul.f32 1.442695, %v792_v26  ;;  %v665_v63 = vsub.f32 %v609_v57, %v637_v19  ;;  %v1307_v19 = vld [vmem:[%s1777_s5 + $0x120] sm:$0xff] }
 0x133   : > { %v1478_v49 = vpop.eup %1477  ;;  %v596_v55 = vsub.f32 %v540_v16, %v592_v13  ;;  %v653_v56 = vand.u32 2147483647, %v2258_v47  ;;  %1491 = vpow2.f32 %v865_v31  ;;  %v664_v4 = vsel %vm2356_vm6, %v661_v34, %v658_v40  ;;  %v1308_v34 = vld [vmem:[%s1777_s5 + $0x138] sm:$0xff] }
 0x134   : > { %v2367_v48 = vpop.eup %1479  ;;  %v709_v12 = vmin.f32 %v2156_v9, 0.0  ;;  %1493 = vpow2.f32 %v797_v32  ;;  %v2373_v2 = vsub.f32 %v2250_v15, %v1301_v41  ;;  %v651_v57 = vadd.f32 1.0, %v650_v24 }
 0x135   : > { %v2375_v6 = vpop.eup %1481  ;;  %v600_v61 = vadd.f32 %v599_v30, %v596_v55  ;;  %v810_v27 = vadd.f32 1.0, %v2353_v0  ;;  %v2379_v16 = vsub.f32 %v2205_v14, %v1302_v8  ;;  %v742_v50 = vadd.f32 1.0, %v741_v44 }
 0x136   : > { %v744_v46 = vand.u32 2147483647, %v2312_v25  ;;  %v813_v60 = vmul.f32 -0.5, %v2353_v0  ;;  %1495 = vpow2.f32 %v799_v52  ;;  %vm2385_vm7 = vcmp.lt.f32.partialorder %v653_v56, 0.0004427343  ;;  %v1316_v56 = vld [vmem:[%s1777_s5 + $0x148] sm:$0xff] }
 0x137   : > { %v2383_v53 = vpop.eup %1483  ;;  %v781_v43 = vmin.f32 %v2217_v51, 0.0  ;;  %v801_v62 = vadd.f32 1.0, %v2367_v48  ;;  %v712_v14 = vmin.f32 %v2226_v7, 0.0  ;;  %v2394_v18 = vsub.f32 %v612_v45, %v664_v4  ;;  %v1313_v51 = vld [vmem:[%s1777_s5 + $0x158] sm:$0xff] }
 0x138   : > { %v649_v35 = vmul.f32 0.6931472, %v1478_v49  ;;  %v756_v21 = vadd.f32 1.0, %v2375_v6  ;;  %v859_v59 = vand.u32 2147483647, %v2373_v2  ;;  %v652_v54 = vmul.f32 %v2258_v47, %v651_v57 }
 0x139   : > { %v669_v33 = vadd.f32 %v665_v63, %v600_v61  ;;  %1497 = vlog2.f32 %v810_v27  ;;  %v860_v26 = vand.u32 2147483647, %v2379_v16  ;;  %v2406_v22 = vmul.f32 %v2312_v25, %v742_v50 }
 0x13a   : > { %v2403_v31 = vpop.eup %1485  ;;  %vm2408_vm8 = vcmp.lt.f32.partialorder %v744_v46, 0.0004427343  ;;  %v814_v13 = vadd.f32 1.0, %v813_v60  ;;  %v732_v47 = vmul.f32 -0.5, %v2316_v29  ;;  %v816_v32 = vand.u32 2147483647, %v2353_v0 }
 0x13b   : > { %v882_v42 = vadd.f32 1.0, %v2383_v53  ;;  %1499 = vlog2.f32 %v801_v62  ;;  %v747_v30 = vadd.f32 1.0, %v2403_v31  ;;  %v655_v25 = vsel %vm2385_vm7, %v652_v54, %v649_v35 }
 0x13c   : > { %v1488_v24 = vpop.eup %1487  ;;  %1501 = vlog2.f32 %v756_v21  ;;  %v863_v41 = vsub.f32 0.0, %v859_v59  ;;  %v2423_v44 = vsub.f32 %v2401_v3, %v1307_v19  ;;  %v670_v52 = vadd.f32 %v669_v33, %v2348_v5 }
 0x13d   : > { %v1490_v8 = vpop.eup %1489  ;;  %v885_v49 = vmul.f32 -0.5, %v2383_v53  ;;  %v864_v63 = vsub.f32 0.0, %v860_v26  ;;  %1503 = vlog2.f32 %v747_v30  ;;  %v2428_v55 = vmul.f32 %v2353_v0, %v814_v13  ;;  %v1312_v13 = vld [vmem:[%s1777_s5 + $0x140] sm:$0xff] }
 0x13e   : > { %v733_v4 = vadd.f32 1.0, %v732_v47  ;;  %v735_v61 = vand.u32 2147483647, %v2316_v29  ;;  %v667_v57 = vsub.f32 %v611_v1, %v655_v25  ;;  %v740_v27 = vmul.f32 0.6931472, %v1488_v24  ;;  %v1310_v25 = vld [vmem:[%s1777_s5 + $0x168] sm:$0xff] }
 0x13f   : > { %v711_v50 = vmin.f32 %v2265_v17, 0.0  ;;  %v2436_v5 = vsub.f32 %v2420_v10, %v1308_v34  ;;  %1505 = vlog2.f32 %v882_v42  ;;  %v731_v60 = vmul.f32 0.6931472, %v1490_v8 }
 0x140   : > { %v2438_v46 = vpop.eup %1491  ;;  %v869_v15 = vmul.f32 1.442695, %v863_v41  ;;  %v957_v62 = vand.u32 2147483647, %v2423_v44  ;;  %v671_v21 = vadd.f32 %v670_v52, %v667_v57  ;;  %v2443_v37 = vadd.f32 1.0, %v885_v49  ;;  %v2465_v41 = vpop.permute.xlu1 %946  ;;  %v1311_v52 = vld [vmem:[%s1777_s5 + $0x128] sm:$0xff] }
 0x141   : > { %v2441_v35 = vpop.eup %1493  ;;  %v804_v1 = vmul.f32 -0.5, %v2367_v48  ;;  %v871_v59 = vmul.f32 1.442695, %v864_v63  ;;  %v734_v54 = vmul.f32 %v2316_v29, %v733_v4  ;;  %vm2447_vm9 = vcmp.lt.f32.partialorder %v735_v61, 0.0004427343 }
 0x142   : > { %v807_v26 = vand.u32 2147483647, %v2367_v48  ;;  %v746_v42 = vsel %vm2408_vm8, %v2406_v22, %v740_v27  ;;  %v2460_v30 = vadd.f32 1.0, %v2438_v46  ;;  %v750_v29 = vmul.f32 -0.5, %v2403_v31 }
 0x143   : > { %v2454_v47 = vpop.eup %1495  ;;  %v958_v24 = vand.u32 2147483647, %v2436_v5  ;;  %v737_v34 = vsel %vm2447_vm9, %v734_v54, %v731_v60  ;;  %v819_v8 = vadd.f32 1.0, %v2441_v35  ;;  %1507 = vpow2.f32 %v869_v15 }
 0x144   : > { %v961_v49 = vsub.f32 0.0, %v957_v62  ;;  %v672_v22 = vadd.f32 %v671_v21, %v2394_v18  ;;  %v805_v45 = vadd.f32 1.0, %v804_v1  ;;  %v2473_v63 = vmul.f32 -0.5, %v2438_v46 }
 0x145   : > { %v2476_v4 = vsub.f32 %v2420_v10, %v1312_v13  ;;  %v759_v57 = vmul.f32 -0.5, %v2375_v6  ;;  %v828_v27 = vadd.f32 1.0, %v2454_v47  ;;  %1509 = vpow2.f32 %v871_v59 }
 0x146   : > { %v1498_v61 = vpop.eup %1497  ;;  %v2481_v60 = vsub.f32 %v2465_v41, %v1310_v25  ;;  %v765_v15 = vsub.f32 %v709_v12, %v737_v34  ;;  %v751_v18 = vadd.f32 1.0, %v750_v29  ;;  %v962_v62 = vsub.f32 0.0, %v958_v24  ;;  %v1315_v34 = vld [vmem:[%s1777_s5 + $0x130] sm:$0xff] }
 0x147   : > { %v2486_v21 = vsub.f32 %v2401_v3, %v1311_v52  ;;  %v766_v54 = vsub.f32 %v710_v39, %v746_v42  ;;  %v753_v33 = vand.u32 2147483647, %v2403_v31  ;;  %1511 = vlog2.f32 %v819_v8  ;;  %v1314_v8 = vld [vmem:[%s1777_s5 + $0x170] sm:$0xff] }
 0x148   : > { %v1500_v1 = vpop.eup %1499  ;;  %v965_v59 = vmul.f32 1.442695, %v961_v49  ;;  %v2491_v25 = vmul.f32 0.6931472, %v1498_v61  ;;  %vm2495_vm10 = vcmp.lt.f32.partialorder %v816_v32, 0.0004427343  ;;  %v769_v12 = vadd.f32 %v765_v15, %v672_v22 }
 0x149   : > { %v1502_v13 = vpop.eup %1501  ;;  %vm2499_vm11 = vcmp.lt.f32.partialorder %v807_v26, 0.0004427343  ;;  %v1030_v11 = vand.u32 2147483647, %v2476_v4  ;;  %v760_v42 = vadd.f32 1.0, %v759_v57  ;;  %1513 = vlog2.f32 %v828_v27 }
 0x14a   : > { %v1504_v39 = vpop.eup %1503  ;;  %v762_v24 = vand.u32 2147483647, %v2375_v6  ;;  %v960_v0 = vand.u32 2147483647, %v2481_v60  ;;  %v752_v52 = vmul.f32 %v2403_v31, %v751_v18  ;;  %v967_v49 = vmul.f32 1.442695, %v962_v62 }
 0x14b   : > { %v749_v32 = vmul.f32 0.6931472, %v1504_v39  ;;  %v1029_v26 = vand.u32 2147483647, %v2486_v21  ;;  %v803_v22 = vmul.f32 0.6931472, %v1500_v1  ;;  %1515 = vpow2.f32 %v965_v59 }
 0x14c   : > { %v758_v61 = vmul.f32 0.6931472, %v1502_v13  ;;  %vm754_vm12 = vcmp.lt.f32.partialorder %v753_v33, 0.0004427343  ;;  %v1506_v15 = vpop.eup %1505  ;;  %v770_v57 = vadd.f32 %v769_v12, %v766_v54  ;;  %v1034_v27 = vsub.f32 0.0, %v1030_v11  ;;  %v942_v13 = vpop.permute.xlu0 %941 }
 0x14d   : > { %v755_v40 = vsel %vm754_vm12, %v752_v52, %v749_v32  ;;  %v2512_v19 = vsub.f32 %v2465_v41, %v1314_v8  ;;  %v806_v39 = vmul.f32 %v2367_v48, %v805_v45  ;;  %v761_v31 = vmul.f32 %v2375_v6, %v760_v42  ;;  %v1309_v45 = vld [vmem:[%s1777_s5 + $0x150] sm:$0xff]  ;;  %v1318_v8 = vld [vmem:[%s1777_s5 + $0x178] sm:$0xff] }
 0x14e   : > { %vm2516_vm13 = vcmp.lt.f32.partialorder %v762_v24, 0.0004427343  ;;  %v964_v62 = vsub.f32 0.0, %v960_v0  ;;  %v767_v1 = vsub.f32 %v711_v50, %v755_v40  ;;  %1517 = vpow2.f32 %v967_v49 }
 0x14f   : > { %v1033_v54 = vsub.f32 0.0, %v1029_v26  ;;  %v2523_v33 = vsub.f32 %v2401_v3, %v1315_v34  ;;  %1519 = vlog2.f32 %v2460_v30  ;;  %v879_v59 = vand.u32 2147483647, %v2438_v46 }
 0x150   : > { %v764_v48 = vsel %vm2516_vm13, %v761_v31, %v758_v61  ;;  %v2530_v6 = vsub.f32 %v2420_v10, %v1316_v56  ;;  %v2533_v17 = vpop.eup %1507  ;;  %v809_v40 = vsel %vm2499_vm11, %v806_v39, %v803_v22  ;;  %v771_v3 = vadd.f32 %v770_v57, %v767_v1 }
 0x151   : > { %v1039_v50 = vmul.f32 1.442695, %v1034_v27  ;;  %v1032_v30 = vand.u32 2147483647, %v2512_v19  ;;  %v818_v12 = vsel %vm2495_vm10, %v2428_v55, %v2491_v25  ;;  %v2543_v10 = vadd.f32 1.0, %v2473_v63 }
 0x152   : > { %v822_v56 = vmul.f32 -0.5, %v2441_v35  ;;  %v971_v11 = vmul.f32 1.442695, %v964_v62  ;;  %v2546_v42 = vpop.eup %1509  ;;  %v768_v29 = vsub.f32 %v712_v14, %v764_v48  ;;  %v1037_v24 = vmul.f32 1.442695, %v1033_v54  ;;  %v1317_v54 = vld [vmem:[%s1777_s5 + $0x160] sm:$0xff] }
 0x153   : > { %v1101_v34 = vand.u32 2147483647, %v2523_v33  ;;  %v2552_v0 = vsub.f32 %v942_v13, %v1309_v45  ;;  %v2554_v9 = vmul.f32 0.6931472, %v1506_v15  ;;  %v837_v55 = vsub.f32 %v781_v43, %v809_v40 }
 0x154   : > { %v831_v63 = vmul.f32 -0.5, %v2454_v47  ;;  %v891_v25 = vadd.f32 1.0, %v2533_v17  ;;  %v1512_v32 = vpop.eup %1511  ;;  %v772_v52 = vadd.f32 %v771_v3, %v768_v29  ;;  %1521 = vpow2.f32 %v1039_v50 }
 0x155   : > { %v1102_v7 = vand.u32 2147483647, %v2530_v6  ;;  %v1036_v14 = vsub.f32 0.0, %v1032_v30  ;;  %v900_v49 = vadd.f32 1.0, %v2546_v42  ;;  %v823_v26 = vadd.f32 1.0, %v822_v56 }
 0x156   : > { %1523 = vpow2.f32 %v971_v11  ;;  %v2563_v22 = vsub.f32 %v2465_v41, %v1318_v8  ;;  %v1514_v43 = vpop.eup %1513  ;;  %v825_v61 = vand.u32 2147483647, %v2441_v35  ;;  %v1105_v15 = vsub.f32 0.0, %v1101_v34 }
 0x157   : > { %1525 = vpow2.f32 %v1037_v24  ;;  %v959_v57 = vand.u32 2147483647, %v2552_v0  ;;  %v832_v27 = vadd.f32 1.0, %v831_v63  ;;  %v834_v39 = vand.u32 2147483647, %v2454_v47 }
 0x158   : > { %v821_v31 = vmul.f32 0.6931472, %v1512_v32  ;;  %1527 = vlog2.f32 %v891_v25  ;;  %v2569_v18 = vpop.eup %1515  ;;  %v841_v62 = vadd.f32 %v837_v55, %v772_v52  ;;  %v1043_v1 = vmul.f32 1.442695, %v1036_v14 }
 0x159   : > { %v963_v41 = vsub.f32 0.0, %v959_v57  ;;  %v2572_v48 = vsub.f32 %v942_v13, %v1313_v51  ;;  %1529 = vlog2.f32 %v900_v49  ;;  %v824_v45 = vmul.f32 %v2441_v35, %v823_v26 }
 0x15a   : > { %v1106_v40 = vsub.f32 0.0, %v1102_v7  ;;  %v1104_v3 = vand.u32 2147483647, %v2563_v22  ;;  %v838_v50 = vsub.f32 %v782_v58, %v818_v12  ;;  %v830_v30 = vmul.f32 0.6931472, %v1514_v43 }
 0x15b   : > { %vm2578_vm14 = vcmp.lt.f32.partialorder %v825_v61, 0.0004427343  ;;  %v1109_v11 = vmul.f32 1.442695, %v1105_v15  ;;  %v2582_v29 = vpop.eup %1517  ;;  %v973_v34 = vadd.f32 1.0, %v2569_v18  ;;  %v2587_v8 = vsub.f32 %v942_v13, %v1317_v54 }
 0x15c   : > { %v827_v24 = vsel %vm2578_vm14, %v824_v45, %v821_v31  ;;  %v969_v35 = vmul.f32 1.442695, %v963_v41  ;;  %v1520_v55 = vpop.eup %1519  ;;  %vm2589_vm15 = vcmp.lt.f32.partialorder %v834_v39, 0.0004427343  ;;  %v842_v58 = vadd.f32 %v841_v62, %v838_v50 }
 0x15d   : > { %1531 = vpow2.f32 %v1043_v1  ;;  %v1031_v12 = vand.u32 2147483647, %v2572_v48  ;;  %v833_v63 = vmul.f32 %v2454_v47, %v832_v27  ;;  %v1111_v25 = vmul.f32 1.442695, %v1106_v40 }
 0x15e   : > { %v1108_v32 = vsub.f32 0.0, %v1104_v3  ;;  %1533 = vpow2.f32 %v969_v35  ;;  %v2899_v52 = vmin.f32 %v2310_v36, 0.0  ;;  %v982_v13 = vadd.f32 1.0, %v2582_v29 }
 0x15f   : > { %1535 = vpow2.f32 %v1109_v11  ;;  %v1035_v14 = vsub.f32 0.0, %v1031_v12  ;;  %v875_v49 = vmul.f32 0.6931472, %v1520_v55  ;;  %v836_v26 = vsel %vm2589_vm15, %v833_v63, %v830_v30 }
 0x160   : > { %v839_v7 = vsub.f32 %v2899_v52, %v827_v24  ;;  %1537 = vlog2.f32 %v973_v34  ;;  %v1103_v51 = vand.u32 2147483647, %v2587_v8  ;;  %v887_v47 = vmul.f32 %v2383_v53, %v2443_v37 }
 0x161   : > { %v878_v43 = vmul.f32 %v2438_v46, %v2543_v10  ;;  %v1041_v36 = vmul.f32 1.442695, %v1035_v14  ;;  %v2605_v15 = vpop.eup %1521  ;;  %v894_v57 = vmul.f32 -0.5, %v2533_v17  ;;  %1539 = vpow2.f32 %v1111_v25 }
 0x162   : > { %v843_v61 = vadd.f32 %v842_v58, %v839_v7  ;;  %v1115_v27 = vmul.f32 1.442695, %v1108_v32  ;;  %v1107_v39 = vsub.f32 0.0, %v1103_v51  ;;  %v2900_v62 = vand.u32 2147483647, %v2383_v53 }
 0x163   : > { %v2608_v31 = vpop.eup %1523  ;;  %vm2618_vm1 = vcmp.lt.f32.partialorder %v879_v59, 0.0004427343  ;;  %v2905_v10 = vmin.f32 %v2306_v28, 0.0  ;;  %1541 = vlog2.f32 %v982_v13  ;;  %v903_v40 = vmul.f32 -0.5, %v2546_v42 }
 0x164   : > { %vm2612_vm0 = vcmp.lt.f32.partialorder %v2900_v62, 0.0004427343  ;;  %v2624_v41 = vpop.eup %1525  ;;  %v881_v45 = vsel %vm2618_vm1, %v878_v43, %v875_v49  ;;  %1543 = vpow2.f32 %v1041_v36  ;;  %v854_v59 = vmin.f32 %v2235_v23, 0.0 }
 0x165   : > { %v840_v54 = vsub.f32 %v2905_v10, %v836_v26  ;;  %v890_v53 = vsel %vm2612_vm0, %v887_v47, %v2554_v9  ;;  %v1528_v46 = vpop.eup %1527  ;;  %v853_v3 = vmin.f32 %v2288_v20, 0.0  ;;  %v1113_v50 = vmul.f32 1.442695, %v1107_v39 }
 0x166   : > { %v895_v30 = vadd.f32 1.0, %v894_v57  ;;  %v1000_v56 = vadd.f32 1.0, %v2608_v31  ;;  %1545 = vpow2.f32 %v1115_v27  ;;  %v1530_v11 = vpop.eup %1529  ;;  %v910_v24 = vsub.f32 %v854_v59, %v890_v53 }
 0x167   : > { %v844_v28 = vadd.f32 %v843_v61, %v840_v54  ;;  %v909_v9 = vsub.f32 %v853_v3, %v881_v45  ;;  %v856_v34 = vmin.f32 %v2379_v16, 0.0  ;;  %v897_v35 = vand.u32 2147483647, %v2533_v17 }
 0x168   : > { %v904_v55 = vadd.f32 1.0, %v903_v40  ;;  %v893_v38 = vmul.f32 0.6931472, %v1528_v46  ;;  %v1045_v58 = vadd.f32 1.0, %v2624_v41  ;;  %1547 = vpow2.f32 %v1113_v50 }
 0x169   : > { %v906_v23 = vand.u32 2147483647, %v2546_v42  ;;  %v855_v20 = vmin.f32 %v2373_v2, 0.0  ;;  %v913_v12 = vadd.f32 %v909_v9, %v844_v28  ;;  %v1054_v63 = vadd.f32 1.0, %v2605_v15 }
 0x16a   : > { %v2641_v25 = vpop.eup %1531  ;;  %v902_v32 = vmul.f32 0.6931472, %v1530_v11  ;;  %v896_v52 = vmul.f32 %v2533_v17, %v895_v30  ;;  %v976_v16 = vmul.f32 -0.5, %v2569_v18  ;;  %1549 = vlog2.f32 %v1000_v56 }
 0x16b   : > { %v2645_v7 = vpop.eup %1533  ;;  %vm2647_vm2 = vcmp.lt.f32.partialorder %v897_v35, 0.0004427343  ;;  %v954_v14 = vmin.f32 %v2436_v5, 0.0  ;;  %v1026_v2 = vmin.f32 %v2476_v4, 0.0  ;;  %v953_v49 = vmin.f32 %v2423_v44, 0.0 }
 0x16c   : > { %v2654_v26 = vpop.eup %1535  ;;  %v905_v51 = vmul.f32 %v2546_v42, %v904_v55  ;;  %v899_v17 = vsel %vm2647_vm2, %v896_v52, %v893_v38  ;;  %1551 = vlog2.f32 %v1045_v58  ;;  %v991_v47 = vadd.f32 1.0, %v2645_v7 }
 0x16d   : > { %v1538_v43 = vpop.eup %1537  ;;  %vm2660_vm3 = vcmp.lt.f32.partialorder %v906_v23, 0.0004427343  ;;  %v914_v36 = vadd.f32 %v913_v12, %v910_v24  ;;  %v985_v57 = vmul.f32 -0.5, %v2582_v29  ;;  %1553 = vlog2.f32 %v1054_v63 }
 0x16e   : > { %v908_v44 = vsel %vm2660_vm3, %v905_v51, %v902_v32  ;;  %v977_v27 = vadd.f32 1.0, %v976_v16  ;;  %v1072_v42 = vadd.f32 1.0, %v2641_v25  ;;  %1555 = vlog2.f32 %v991_v47  ;;  %v2668_v39 = vpop.eup %1539 }
 0x16f   : > { %v911_v62 = vsub.f32 %v855_v20, %v899_v17  ;;  %v1057_v1 = vmul.f32 -0.5, %v2605_v15  ;;  %v979_v37 = vand.u32 2147483647, %v2569_v18  ;;  %v1117_v10 = vadd.f32 1.0, %v2654_v26 }
 0x170   : > { %v1542_v54 = vpop.eup %1541  ;;  %v988_v53 = vand.u32 2147483647, %v2582_v29  ;;  %v975_v45 = vmul.f32 0.6931472, %v1538_v43  ;;  %v1025_v40 = vmin.f32 %v2486_v21, 0.0  ;;  %v1097_v46 = vmin.f32 %v2523_v33, 0.0 }
 0x171   : > { %v2676_v59 = vpop.eup %1543  ;;  %v912_v3 = vsub.f32 %v856_v34, %v908_v44  ;;  %v915_v28 = vadd.f32 %v914_v36, %v911_v62  ;;  %v986_v50 = vadd.f32 1.0, %v985_v57  ;;  %v1060_v30 = vand.u32 2147483647, %v2605_v15 }
 0x172   : > { %v1126_v56 = vadd.f32 1.0, %v2668_v39  ;;  %v978_v11 = vmul.f32 %v2569_v18, %v977_v27  ;;  %1557 = vlog2.f32 %v1072_v42  ;;  %v1063_v24 = vadd.f32 1.0, %v2676_v59 }
 0x173   : > { %v2682_v9 = vpop.eup %1545  ;;  %v1058_v35 = vadd.f32 1.0, %v1057_v1  ;;  %vm2684_vm4 = vcmp.lt.f32.partialorder %v979_v37, 0.0004427343  ;;  %1559 = vlog2.f32 %v1117_v10  ;;  %v1003_v34 = vmul.f32 -0.5, %v2608_v31 }
 0x174   : > { %v984_v38 = vmul.f32 0.6931472, %v1542_v54  ;;  %v981_v58 = vsel %vm2684_vm4, %v978_v11, %v975_v45  ;;  %v994_v23 = vmul.f32 -0.5, %v2645_v7  ;;  %1561 = vlog2.f32 %v1063_v24 }
 0x175   : > { %v2692_v18 = vpop.eup %1547  ;;  %v987_v20 = vmul.f32 %v2582_v29, %v986_v50  ;;  %v916_v12 = vadd.f32 %v915_v28, %v912_v3  ;;  %v956_v63 = vmin.f32 %v2481_v60, 0.0  ;;  %v1028_v32 = vmin.f32 %v2512_v19, 0.0 }
 0x176   : > { %1563 = vlog2.f32 %v1126_v56  ;;  %v1048_v52 = vmul.f32 -0.5, %v2624_v41  ;;  %v1144_v16 = vadd.f32 1.0, %v2682_v9  ;;  %v1135_v13 = vadd.f32 1.0, %v2692_v18 }
 0x177   : > { %v1550_v51 = vpop.eup %1549  ;;  %vm2700_vm5 = vcmp.lt.f32.partialorder %v988_v53, 0.0004427343  ;;  %v1129_v47 = vmul.f32 -0.5, %v2668_v39  ;;  %v1009_v29 = vsub.f32 %v953_v49, %v981_v58  ;;  %v1004_v43 = vadd.f32 1.0, %v1003_v34 }
 0x178   : > { %v990_v60 = vsel %vm2700_vm5, %v987_v20, %v984_v38  ;;  %v1059_v61 = vmul.f32 %v2605_v15, %v1058_v35  ;;  %vm2708_vm6 = vcmp.lt.f32.partialorder %v1060_v30, 0.0004427343  ;;  %v995_v57 = vadd.f32 1.0, %v994_v23 }
 0x179   : > { %1565 = vlog2.f32 %v1135_v13  ;;  %v1552_v44 = vpop.eup %1551  ;;  %v1013_v27 = vadd.f32 %v1009_v29, %v916_v12  ;;  %v1006_v42 = vand.u32 2147483647, %v2608_v31  ;;  %v955_v62 = vmin.f32 %v2552_v0, 0.0 }
 0x17a   : > { %v997_v49 = vand.u32 2147483647, %v2645_v7  ;;  %v1554_v1 = vpop.eup %1553  ;;  %v1049_v37 = vadd.f32 1.0, %v1048_v52  ;;  %v1002_v10 = vmul.f32 0.6931472, %v1550_v51  ;;  %1567 = vlog2.f32 %v1144_v16 }
 0x17b   : > { %v1066_v15 = vmul.f32 -0.5, %v2676_v59  ;;  %v1556_v54 = vpop.eup %1555  ;;  %v1010_v53 = vsub.f32 %v954_v14, %v990_v60  ;;  %v1051_v45 = vand.u32 2147483647, %v2624_v41  ;;  %v1120_v3 = vmul.f32 -0.5, %v2654_v26 }
 0x17c   : > { %v1005_v28 = vmul.f32 %v2608_v31, %v1004_v43  ;;  %v1047_v50 = vmul.f32 0.6931472, %v1552_v44  ;;  %v1075_v0 = vmul.f32 -0.5, %v2641_v25  ;;  %v993_v30 = vmul.f32 0.6931472, %v1556_v54 }
 0x17d   : > { %v996_v56 = vmul.f32 %v2645_v7, %v995_v57  ;;  %v1056_v11 = vmul.f32 0.6931472, %v1554_v1  ;;  %vm2723_vm7 = vcmp.lt.f32.partialorder %v1006_v42, 0.0004427343  ;;  %v1014_v35 = vadd.f32 %v1013_v27, %v1010_v53 }
 0x17e   : > { %vm998_vm8 = vcmp.lt.f32.partialorder %v997_v49, 0.0004427343  ;;  %v1050_v5 = vmul.f32 %v2624_v41, %v1049_v37  ;;  %v1008_v14 = vsel %vm2723_vm7, %v1005_v28, %v1002_v10  ;;  %v1067_v31 = vadd.f32 1.0, %v1066_v15 }
 0x17f   : > { %v999_v55 = vsel %vm998_vm8, %v996_v56, %v993_v30  ;;  %v1558_v34 = vpop.eup %1557  ;;  %v1132_v38 = vand.u32 2147483647, %v2668_v39  ;;  %vm2731_vm9 = vcmp.lt.f32.partialorder %v1051_v45, 0.0004427343  ;;  %v1069_v23 = vand.u32 2147483647, %v2676_v59 }
 0x180   : > { %v1011_v7 = vsub.f32 %v955_v62, %v999_v55  ;;  %v1560_v20 = vpop.eup %1559  ;;  %v1130_v12 = vadd.f32 1.0, %v1129_v47  ;;  %v1053_v41 = vsel %vm2731_vm9, %v1050_v5, %v1047_v50  ;;  %v1121_v52 = vadd.f32 1.0, %v1120_v3 }
 0x181   : > { %v1076_v16 = vadd.f32 1.0, %v1075_v0  ;;  %v1562_v13 = vpop.eup %1561  ;;  %v1062_v51 = vsel %vm2708_vm6, %v1059_v61, %v1056_v11  ;;  %v1012_v17 = vsub.f32 %v956_v63, %v1008_v14  ;;  %v1078_v29 = vand.u32 2147483647, %v2641_v25 }
 0x182   : > { %v1015_v43 = vadd.f32 %v1014_v35, %v1011_v7  ;;  %v1074_v60 = vmul.f32 0.6931472, %v1558_v34  ;;  %v1065_v57 = vmul.f32 0.6931472, %v1562_v13  ;;  %v1068_v44 = vmul.f32 %v2676_v59, %v1067_v31 }
 0x183   : > { %v1138_v27 = vmul.f32 -0.5, %v2692_v18  ;;  %v1564_v47 = vpop.eup %1563  ;;  %v1081_v42 = vsub.f32 %v1025_v40, %v1053_v41  ;;  %v1123_v62 = vand.u32 2147483647, %v2654_v26  ;;  %vm2746_vm10 = vcmp.lt.f32.partialorder %v1069_v23, 0.0004427343 }
 0x184   : > { %v1016_v49 = vadd.f32 %v1015_v43, %v1012_v17  ;;  %v1119_v63 = vmul.f32 0.6931472, %v1560_v20  ;;  %v1077_v61 = vmul.f32 %v2641_v25, %v1076_v16  ;;  %v1147_v1 = vmul.f32 -0.5, %v2682_v9 }
 0x185   : > { %v1071_v59 = vsel %vm2746_vm10, %v1068_v44, %v1065_v57  ;;  %v1082_v21 = vsub.f32 %v1026_v2, %v1062_v51  ;;  %vm2756_vm11 = vcmp.lt.f32.partialorder %v1078_v29, 0.0004427343  ;;  %v1027_v10 = vmin.f32 %v2572_v48, 0.0 }
 0x186   : > { %v1566_v37 = vpop.eup %1565  ;;  %v1085_v15 = vadd.f32 %v1081_v42, %v1016_v49  ;;  %v1128_v54 = vmul.f32 0.6931472, %v1564_v47  ;;  %v1122_v53 = vmul.f32 %v2654_v26, %v1121_v52  ;;  %v1080_v25 = vsel %vm2756_vm11, %v1077_v61, %v1074_v60 }
 0x187   : > { %v1139_v45 = vadd.f32 1.0, %v1138_v27  ;;  %v1568_v3 = vpop.eup %1567  ;;  %vm2764_vm12 = vcmp.lt.f32.partialorder %v1123_v62, 0.0004427343  ;;  %v1083_v4 = vsub.f32 %v1027_v10, %v1071_v59  ;;  %v1141_v50 = vand.u32 2147483647, %v2692_v18 }
 0x188   : > { %v1086_v2 = vadd.f32 %v1085_v15, %v1082_v21  ;;  %v1131_v48 = vmul.f32 %v2668_v39, %v1130_v12  ;;  %v1125_v0 = vsel %vm2764_vm12, %v1122_v53, %v1119_v63  ;;  %v1148_v26 = vadd.f32 1.0, %v1147_v1 }
 0x189   : > { %v1137_v30 = vmul.f32 0.6931472, %v1566_v37  ;;  %vm1133_vm13 = vcmp.lt.f32.partialorder %v1132_v38, 0.0004427343  ;;  %v1084_v56 = vsub.f32 %v1028_v32, %v1080_v25  ;;  %v1150_v11 = vand.u32 2147483647, %v2682_v9 }
 0x18a   : > { %v1087_v24 = vadd.f32 %v1086_v2, %v1083_v4  ;;  %v1134_v35 = vsel %vm1133_vm13, %v1131_v48, %v1128_v54  ;;  %v1146_v5 = vmul.f32 0.6931472, %v1568_v3  ;;  %v1140_v14 = vmul.f32 %v2692_v18, %v1139_v45 }
 0x18b   : > { %v1098_v39 = vmin.f32 %v2530_v6, 0.0  ;;  %v1153_v55 = vsub.f32 %v1097_v46, %v1125_v0  ;;  %vm1142_vm14 = vcmp.lt.f32.partialorder %v1141_v50, 0.0004427343  ;;  %v1149_v34 = vmul.f32 %v2682_v9, %v1148_v26 }
 0x18c   : > { %v1088_v31 = vadd.f32 %v1087_v24, %v1084_v56  ;;  %v1143_v19 = vsel %vm1142_vm14, %v1140_v14, %v1137_v30  ;;  %vm1151_vm15 = vcmp.lt.f32.partialorder %v1150_v11, 0.0004427343  ;;  %v1099_v38 = vmin.f32 %v2587_v8, 0.0 }
 0x18d   : > { %v1154_v32 = vsub.f32 %v1098_v39, %v1134_v35  ;;  %v1152_v7 = vsel %vm1151_vm15, %v1149_v34, %v1146_v5  ;;  %v1100_v18 = vmin.f32 %v2563_v22, 0.0 }
 0x18e   : > { %v1157_v58 = vadd.f32 %v1153_v55, %v1088_v31  ;;  %v1155_v23 = vsub.f32 %v1099_v38, %v1143_v19 }
 0x18f   : > { %v1156_v33 = vsub.f32 %v1100_v18, %v1152_v7 }
 0x190   : > { %v1158_v6 = vadd.f32 %v1157_v58, %v1154_v32 }
 0x192   : > { %v1159_v46 = vadd.f32 %v1158_v6, %v1155_v23 }
 0x194   : > { %v1160_v20 = vadd.f32 %v1159_v46, %v1156_v33 }
 0x196   : > { %1161 = vst [vmem:[%s178_s8] sm:$0xff] %v1160_v20 }
 0x197   : > { %1610 = shalt.err (!%p1607_p13)
}
 0x198   : > { %s1611_s4 = scalar_lea.hbm %s1174_s22, 128  ;;  %s1615_s27 = scalar_lea.hbm %s2819_s2, 384 }
 0x199   : > { %p1612_p1 = scmp.ne.s32.totalorder %s1174_s22, %s1611_s4  ;;  %p1616_p3 = scmp.lt.s32.totalorder %s1174_s22, %s2819_s2 }
 0x19a   : > { %p1617_p6 = scmp.lt.s32.totalorder %s1615_s27, %s1611_s4 }
 0x19b   : > { %p1613_p0 = pnand %p1612_p1, %p2926_p12 }
 0x19c   : > { %p1618_p10 = por %p1617_p6, %p1616_p3 }
 0x19d   : > { %p1614_p2 = pneg %p1613_p0 }
 0x19f   : > { %p1619_p11 = pnand %p1618_p10, %p1614_p2 }
 0x1a1   : > { %1622 = shalt.err (!%p1619_p11)
}
 0x1a2   : > { %1328 = dma.vmem_to_hbm [thread:$0]  (%p2926_p12), %s1177_s14, 128, %s1174_s22, %s1163_s23  }
 0x1a3 PF: > { %p1339_p4 = scmp.ge.s32.totalorder %s1661_s12, 2  ;;  %s1188_s3 = sand.u32 1, %s1649_s9  }
 0x1a4   : > { %p2927_p5 = scmp.ne.s32.totalorder %s2824_s21, 0  ;;  %s1189_s6 = scalar_lea.sflag [#allocation4], %s1188_s3 }
 0x1a6   : > { %p1335_p7 = pnand %p1339_p4, %p2927_p5 }
 0x1a8   : > { %p1336_p8 = pneg %p1335_p7 }
 0x1aa   : > { %1644 = dma.done.wait (%p1336_p8), %s1189_s6, 128  }
 0x1ab   : > { %1646 = vsyncadd (%p1336_p8), %s1189_s6, 4294967168  ;;  %p15_p9 = scmp.ge.s32.totalorder %s1708_s15, 5   ;;  %s2928_s9 = smov %s1653_s10 }
 0x1ac   : > { %s2929_s10 = smov %s1657_s11  ;;  %s2930_s11 = smov %s1720_s18 }
 0x1ad   : > { %s2931_s12 = smov %s1708_s15  ;;  %17 = sbr.rel (!%p15_p9) target bundleno = 5 (0x5), region = 83 }
 0x1b2   :  { %1194 = vsyncpa [#allocation3], 1 }
 0x1b3   :  { %1196 = vsyncpa [#allocation3 + $0x1], 1 }
 0x1b4   :  { %1197 = vsyncpa [#allocation4], 1 }
 0x1b5   :  { %1199 = vsyncpa [#allocation4 + $0x1], 1 }

</bundles_post_ra>
